<compile_context>
chip_gen: v5e
topology: v5e:2x2
jax: 0.10.0
libtpu: 0.0.40
codegen_flags: <defaults>
</compile_context>

<pallas_src>
import math
import functools

import jax
import jax.numpy as jnp
from jax.experimental import pallas as pl
from jax.experimental.pallas import tpu as pltpu

# ----- hyper-parameters (module defaults) -----
EMBED_DIM = 256
N_HEADS = 4
HEAD_DIM = EMBED_DIM // N_HEADS
POSFF_DIM = 512
N_LAYERS = 1
VOCAB_X = 50
PAD_X = 0
POS_MAXLEN = 300
LN_EPS = 1e-5            # torch.nn.LayerNorm default
MASK_FILL = -1e-10       # masked_fill(mask == 0, -epsilon), epsilon = 1e-10


# ============================ fused encoder-layer kernel ============================

def _layernorm(x, g, b):
    mu = jnp.mean(x, axis=-1, keepdims=True)
    var = jnp.mean((x - mu) ** 2, axis=-1, keepdims=True)
    return (x - mu) * jax.lax.rsqrt(var + LN_EPS) * g + b


def _encoder_layer_kernel(x_ref, m_ref,
                          wqkv_ref, bqkv_ref, wo_ref, bo_ref,
                          ln1g_ref, ln1b_ref,
                          w1_ref, b1_ref, w2_ref, b2_ref,
                          ln2g_ref, ln2b_ref,
                          o_ref, att_ref, ctx_ref, *, inv_scale):
    b_blk, S, D = x_ref.shape
    rows = b_blk * S

    x3 = x_ref[...]                               # (Bb, S, D)
    x2d = x3.reshape(rows, D)                     # fold batch -> M rows for the MXU
    key_pad = m_ref[...] == 0.0                   # (Bb, 1, S) -- hoisted out of head loop

    # fused Q|K|V projection: one (Bb*S, D) x (D, 3D) MXU pass
    qkv = jnp.dot(x2d, wqkv_ref[...], preferred_element_type=jnp.float32) + bqkv_ref[...]
    # reference quirk: scale = sqrt(embed_dim); applied once to Q (not per-head)
    q3 = (qkv[:, :D] * inv_scale).reshape(b_blk, S, D)
    k3 = qkv[:, D:2 * D].reshape(b_blk, S, D)
    v3 = qkv[:, 2 * D:].reshape(b_blk, S, D)

    # per-head attention, batched over the whole B_blk block
    probs = []
    for h in range(N_HEADS):
        lo, hi = h * HEAD_DIM, (h + 1) * HEAD_DIM
        qh = q3[..., lo:hi]                       # (Bb, S, hd)
        kh = k3[..., lo:hi]
        vh = v3[..., lo:hi]
        energy = jnp.einsum('bqd,bkd->bqk', qh, kh,
                            preferred_element_type=jnp.float32)      # (Bb, S, S)
        # reference quirk: masked positions filled with -1e-10 (not -inf)
        energy = jnp.where(key_pad, MASK_FILL, energy)
        emax = jnp.max(energy, axis=-1, keepdims=True)
        p = jnp.exp(energy - emax)
        p = p * pl.reciprocal(jnp.sum(p, axis=-1, keepdims=True), approx=True)
        probs.append(p)
        ctx_h = jnp.einsum('bqk,bkd->bqd', p, vh,
                           preferred_element_type=jnp.float32)       # (Bb, S, hd)
        # write each head's result at its static lane offset (no concat)
        ctx_ref[:, lo:hi] = ctx_h.reshape(rows, HEAD_DIM)
    # single stacked store of the attention scores for this block
    att_ref[...] = jnp.stack(probs, axis=1)       # (Bb, H, S, S)

    # output projection + residual + LayerNorm 1 (all in VMEM)
    ctx = ctx_ref[...]                            # (Bb*S, D)
    att_out = jnp.dot(ctx, wo_ref[...], preferred_element_type=jnp.float32) + bo_ref[...]
    x1 = _layernorm(x2d + att_out, ln1g_ref[...], ln1b_ref[...])

    # position-wise FFN (hidden stays in VMEM) + residual + LayerNorm 2
    hdn = jnp.maximum(
        jnp.dot(x1, w1_ref[...], preferred_element_type=jnp.float32) + b1_ref[...], 0.0)
    ff = jnp.dot(hdn, w2_ref[...], preferred_element_type=jnp.float32) + b2_ref[...]
    x2 = _layernorm(x1 + ff, ln2g_ref[...], ln2b_ref[...])

    o_ref[...] = x2.reshape(b_blk, S, D)


def _pick_batch_block(B, S, target_rows=256):
    """Fold batch so the big matmuls see M = B_blk*S ~= target_rows, while
    keeping >= 2 grid steps (v7x has 2 TensorCores) whenever the batch allows."""
    b_blk = max(1, min(B, target_rows // max(S, 1)))
    if B >= 2:
        b_blk = min(b_blk, (B + 1) // 2)
    while B % b_blk:
        b_blk -= 1
    return b_blk


def encoder_layer(p, x, mask):
    """x: (B, S, D) f32, mask: (B, 1, S) f32 pad mask (1 keep / 0 pad)."""
    B, S, D = x.shape
    b_blk = _pick_batch_block(B, S)
    n_blocks = B // b_blk
    kern = functools.partial(_encoder_layer_kernel, inv_scale=1.0 / math.sqrt(D))
    w2d = lambda b: (0, 0)                         # constant index_map: weights fetched once
    return pl.pallas_call(
        kern,
        out_shape=(jax.ShapeDtypeStruct((B, S, D), jnp.float32),
                   jax.ShapeDtypeStruct((B, N_HEADS, S, S), jnp.float32)),
        grid=(n_blocks,),
        in_specs=[
            pl.BlockSpec((b_blk, S, D), lambda b: (b, 0, 0)),        # x
            pl.BlockSpec((b_blk, 1, S), lambda b: (b, 0, 0)),        # pad mask
            pl.BlockSpec((D, 3 * D), w2d),                           # wqkv
            pl.BlockSpec((1, 3 * D), w2d),                           # bqkv
            pl.BlockSpec((D, D), w2d),                               # wo
            pl.BlockSpec((1, D), w2d),                               # bo
            pl.BlockSpec((1, D), w2d),                               # ln1 gamma
            pl.BlockSpec((1, D), w2d),                               # ln1 beta
            pl.BlockSpec((D, POSFF_DIM), w2d),                       # w1
            pl.BlockSpec((1, POSFF_DIM), w2d),                       # b1
            pl.BlockSpec((POSFF_DIM, D), w2d),                       # w2
            pl.BlockSpec((1, D), w2d),                               # b2
            pl.BlockSpec((1, D), w2d),                               # ln2 gamma
            pl.BlockSpec((1, D), w2d),                               # ln2 beta
        ],
        out_specs=(pl.BlockSpec((b_blk, S, D), lambda b: (b, 0, 0)),
                   pl.BlockSpec((b_blk, N_HEADS, S, S), lambda b: (b, 0, 0, 0))),
        scratch_shapes=[pltpu.VMEM((b_blk * S, D), jnp.float32)],    # per-head ctx assembly
        compiler_params=pltpu.CompilerParams(
            dimension_semantics=("parallel",),       # batch blocks split across TCs on v7x
            vmem_limit_bytes=32 * 1024 * 1024,
        ),
    )(x, mask,
      p["wqkv"], p["bqkv"], p["wo"], p["bo"],
      p["ln1_g"], p["ln1_b"],
      p["w1"], p["b1"], p["w2"], p["b2"],
      p["ln2_g"], p["ln2_b"])


# ============================ model glue (plain JAX) ============================

def positional_embedding(seq_len, D):
    pos = jnp.arange(POS_MAXLEN, dtype=jnp.float32)[:, None]
    idx2 = jnp.arange(0, D, 2, dtype=jnp.float32)
    angle = pos / jnp.power(10000.0, idx2 / D)
    pe = jnp.zeros((POS_MAXLEN, D), jnp.float32)
    pe = pe.at[:, 0::2].set(jnp.sin(angle))
    pe = pe.at[:, 1::2].set(jnp.cos(angle))          # D is even
    return pe[:seq_len]


def encoder_forward(params, X, X_mask=None):
    """Faithful to Encoder.forward: returns (encoder_output, last attention score)."""
    B, S = X.shape
    D = EMBED_DIM
    if X_mask is None:
        X_mask = (X != PAD_X)                         # make_X_mask semantics
    mask = X_mask.astype(jnp.float32).reshape(B, 1, S)

    # embedding * sqrt(D) + positional embedding (gather stays in plain JAX)
    x_in = params["emb"][X] * math.sqrt(D) + positional_embedding(S, D)

    enc_out, att_score = x_in, None
    for layer_p in params["layers"]:
        enc_out, att_score = encoder_layer(layer_p, enc_out, mask)
    return enc_out, att_score


# ============================ deterministic parameter init ============================

def _init_linear(key, din, dout):
    kw, kb = jax.random.split(key)
    lim = 1.0 / math.sqrt(din)
    w = jax.random.uniform(kw, (din, dout), jnp.float32, -lim, lim)
    b = jax.random.uniform(kb, (1, dout), jnp.float32, -lim, lim)
    return w, b


def _init_encoder_layer(key, D, Dff):
    ks = jax.random.split(key, 6)
    wq, bq = _init_linear(ks[0], D, D)
    wk, bk = _init_linear(ks[1], D, D)
    wv, bv = _init_linear(ks[2], D, D)
    wo, bo = _init_linear(ks[3], D, D)
    w1, b1 = _init_linear(ks[4], D, Dff)
    w2, b2 = _init_linear(ks[5], Dff, D)
    return dict(
        wqkv=jnp.concatenate([wq, wk, wv], axis=1),          # (D, 3D) fused QKV
        bqkv=jnp.concatenate([bq, bk, bv], axis=1),          # (1, 3D)
        wo=wo, bo=bo,
        ln1_g=jnp.ones((1, D), jnp.float32), ln1_b=jnp.zeros((1, D), jnp.float32),
        w1=w1, b1=b1, w2=w2, b2=b2,
        ln2_g=jnp.ones((1, D), jnp.float32), ln2_b=jnp.zeros((1, D), jnp.float32),
    )


def init_params(key):
    D = EMBED_DIM
    ks = jax.random.split(key, N_LAYERS + 1)
    layers = [_init_encoder_layer(ks[i], D, POSFF_DIM) for i in range(N_LAYERS)]
    emb = jax.random.normal(ks[-1], (VOCAB_X, D), jnp.float32)
    return dict(emb=emb, layers=layers)


# ============================ main ============================

if __name__ == "__main__":
    key = jax.random.PRNGKey(0)
    kp, kx = jax.random.split(key)
    params = init_params(kp)

    B, S = 2, 8
    X = jax.random.randint(kx, (B, S), 1, VOCAB_X, dtype=jnp.int32)
    X = X.at[:, -2:].set(PAD_X)          # add pad tokens so the mask path is exercised

    enc_out, att_score = jax.jit(encoder_forward)(params, X)
    enc_out = jax.block_until_ready(enc_out)
    att_score = jax.block_until_ready(att_score)

    assert enc_out.shape == (B, S, EMBED_DIM) and enc_out.dtype == jnp.float32
    assert att_score.shape == (B, N_HEADS, S, S) and att_score.dtype == jnp.float32
    assert bool(jnp.all(jnp.isfinite(enc_out)))
    assert bool(jnp.all(jnp.isfinite(att_score)))
    print("KERNEL_OK")
</pallas_src>

<mosaic_0001>
module attributes {stable_mosaic.version = 11 : i64} {
  func.func @_encoder_layer_kernel(%arg0: i32, %arg1: memref<1x8x256xf32, #tpu.memory_space<vmem>>, %arg2: memref<1x1x8xf32, #tpu.memory_space<vmem>>, %arg3: memref<256x768xf32, #tpu.memory_space<vmem>>, %arg4: memref<1x768xf32, #tpu.memory_space<vmem>>, %arg5: memref<256x256xf32, #tpu.memory_space<vmem>>, %arg6: memref<1x256xf32, #tpu.memory_space<vmem>>, %arg7: memref<1x256xf32, #tpu.memory_space<vmem>>, %arg8: memref<1x256xf32, #tpu.memory_space<vmem>>, %arg9: memref<256x512xf32, #tpu.memory_space<vmem>>, %arg10: memref<1x512xf32, #tpu.memory_space<vmem>>, %arg11: memref<512x256xf32, #tpu.memory_space<vmem>>, %arg12: memref<1x256xf32, #tpu.memory_space<vmem>>, %arg13: memref<1x256xf32, #tpu.memory_space<vmem>>, %arg14: memref<1x256xf32, #tpu.memory_space<vmem>>, %arg15: memref<1x8x256xf32, #tpu.memory_space<vmem>>, %arg16: memref<1x4x8x8xf32, #tpu.memory_space<vmem>>, %arg17: memref<8x256xf32, #tpu.memory_space<vmem>>) attributes {dimension_semantics = [#tpu.dimension_semantics<parallel>], iteration_bounds = array<i64: 2>, scalar_prefetch = 0 : i64, scratch_operands = 1 : i64, tpu.core_type = #tpu.core_type<tc>, window_params = [{transform_indices = @transform_0, window_bounds = array<i64: 1, 8, 256>}, {transform_indices = @transform_1, window_bounds = array<i64: 1, 1, 8>}, {pipeline_mode = #tpu.pipeline_mode<synchronous>, transform_indices = @transform_2, window_bounds = array<i64: 256, 768>}, {pipeline_mode = #tpu.pipeline_mode<synchronous>, transform_indices = @transform_3, window_bounds = array<i64: 1, 768>}, {pipeline_mode = #tpu.pipeline_mode<synchronous>, transform_indices = @transform_4, window_bounds = array<i64: 256, 256>}, {pipeline_mode = #tpu.pipeline_mode<synchronous>, transform_indices = @transform_5, window_bounds = array<i64: 1, 256>}, {pipeline_mode = #tpu.pipeline_mode<synchronous>, transform_indices = @transform_6, window_bounds = array<i64: 1, 256>}, {pipeline_mode = #tpu.pipeline_mode<synchronous>, transform_indices = @transform_7, window_bounds = array<i64: 1, 256>}, {pipeline_mode = #tpu.pipeline_mode<synchronous>, transform_indices = @transform_8, window_bounds = array<i64: 256, 512>}, {pipeline_mode = #tpu.pipeline_mode<synchronous>, transform_indices = @transform_9, window_bounds = array<i64: 1, 512>}, {pipeline_mode = #tpu.pipeline_mode<synchronous>, transform_indices = @transform_10, window_bounds = array<i64: 512, 256>}, {pipeline_mode = #tpu.pipeline_mode<synchronous>, transform_indices = @transform_11, window_bounds = array<i64: 1, 256>}, {pipeline_mode = #tpu.pipeline_mode<synchronous>, transform_indices = @transform_12, window_bounds = array<i64: 1, 256>}, {pipeline_mode = #tpu.pipeline_mode<synchronous>, transform_indices = @transform_13, window_bounds = array<i64: 1, 256>}, {transform_indices = @transform_14, window_bounds = array<i64: 1, 8, 256>}, {transform_indices = @transform_15, window_bounds = array<i64: 1, 4, 8, 8>}]} {
    %c0 = arith.constant 0 : index
    %c0_0 = arith.constant 0 : index
    %c0_1 = arith.constant 0 : index
    %0 = vector.load %arg1[%c0, %c0_0, %c0_1] : memref<1x8x256xf32, #tpu.memory_space<vmem>>, vector<1x8x256xf32>
    %1 = vector.shape_cast %0 : vector<1x8x256xf32> to vector<8x256xf32>
    %c0_2 = arith.constant 0 : index
    %c0_3 = arith.constant 0 : index
    %c0_4 = arith.constant 0 : index
    %2 = vector.load %arg2[%c0_2, %c0_3, %c0_4] : memref<1x1x8xf32, #tpu.memory_space<vmem>>, vector<1x1x8xf32>
    %cst = arith.constant 0.000000e+00 : f32
    %3 = vector.broadcast %cst : f32 to vector<1x1x8xf32>
    %4 = arith.cmpf oeq, %2, %3 : vector<1x1x8xf32>
    %c0_5 = arith.constant 0 : index
    %c0_6 = arith.constant 0 : index
    %5 = vector.load %arg3[%c0_5, %c0_6] : memref<256x768xf32, #tpu.memory_space<vmem>>, vector<256x768xf32>
    %cst_7 = arith.constant dense<0.000000e+00> : vector<8x768xf32>
    %6 = tpu.matmul %1, %5, %cst_7 {dimension_numbers = #tpu.dot_dimension_numbers<[1], [0], [0], [1], [0, 0, 1, 1], [], []>} : vector<8x256xf32>, vector<256x768xf32>, vector<8x768xf32> -> vector<8x768xf32>
    %c0_8 = arith.constant 0 : index
    %c0_9 = arith.constant 0 : index
    %7 = vector.load %arg4[%c0_8, %c0_9] : memref<1x768xf32, #tpu.memory_space<vmem>>, vector<1x768xf32>
    %8 = vector.broadcast %7 : vector<1x768xf32> to vector<8x768xf32>
    %9 = arith.addf %6, %8 : vector<8x768xf32>
    %10 = vector.extract_strided_slice %9 {offsets = [0, 0], sizes = [8, 256], strides = [1, 1]} : vector<8x768xf32> to vector<8x256xf32>
    %cst_10 = arith.constant 6.250000e-02 : f32
    %11 = vector.broadcast %cst_10 : f32 to vector<8x256xf32>
    %12 = arith.mulf %10, %11 : vector<8x256xf32>
    %13 = vector.shape_cast %12 : vector<8x256xf32> to vector<1x8x256xf32>
    %14 = vector.extract_strided_slice %9 {offsets = [0, 256], sizes = [8, 256], strides = [1, 1]} : vector<8x768xf32> to vector<8x256xf32>
    %15 = vector.shape_cast %14 : vector<8x256xf32> to vector<1x8x256xf32>
    %16 = vector.extract_strided_slice %9 {offsets = [0, 512], sizes = [8, 256], strides = [1, 1]} : vector<8x768xf32> to vector<8x256xf32>
    %17 = vector.shape_cast %16 : vector<8x256xf32> to vector<1x8x256xf32>
    %18 = vector.extract_strided_slice %13 {offsets = [0, 0, 0], sizes = [1, 8, 64], strides = [1, 1, 1]} : vector<1x8x256xf32> to vector<1x8x64xf32>
    %19 = vector.extract_strided_slice %15 {offsets = [0, 0, 0], sizes = [1, 8, 64], strides = [1, 1, 1]} : vector<1x8x256xf32> to vector<1x8x64xf32>
    %20 = vector.extract_strided_slice %17 {offsets = [0, 0, 0], sizes = [1, 8, 64], strides = [1, 1, 1]} : vector<1x8x256xf32> to vector<1x8x64xf32>
    "tpu.trace_start"() <{level = 10 : i32, message = "bqd,bkd->bqk"}> : () -> ()
    %cst_11 = arith.constant dense<0.000000e+00> : vector<1x8x8xf32>
    %21 = tpu.matmul %18, %19, %cst_11 {dimension_numbers = #tpu.dot_dimension_numbers<[2], [2], [1], [1], [0, 0, 0, 1, 1, 1], [0], [0]>} : vector<1x8x64xf32>, vector<1x8x64xf32>, vector<1x8x8xf32> -> vector<1x8x8xf32>
    %cst_12 = arith.constant -1.000000e-10 : f32
    "tpu.trace_stop"() : () -> ()
    %22 = vector.shape_cast %4 : vector<1x1x8xi1> to vector<1x1x8xi1>
    %23 = vector.broadcast %22 : vector<1x1x8xi1> to vector<1x8x8xi1>
    %24 = vector.broadcast %cst_12 : f32 to vector<1x8x8xf32>
    %25 = arith.select %23, %24, %21 : vector<1x8x8xi1>, vector<1x8x8xf32>
    %cst_13 = arith.constant dense<0xFF800000> : vector<1x8xf32>
    %26 = vector.multi_reduction <maximumf>, %25, %cst_13 [2] : vector<1x8x8xf32> to vector<1x8xf32>
    %27 = vector.shape_cast %26 : vector<1x8xf32> to vector<1x8x1xf32>
    %28 = vector.broadcast %27 : vector<1x8x1xf32> to vector<1x8x8xf32>
    %29 = arith.subf %25, %28 : vector<1x8x8xf32>
    %30 = math.exp %29 : vector<1x8x8xf32>
    %cst_14 = arith.constant dense<0.000000e+00> : vector<1x8xf32>
    %31 = vector.multi_reduction <add>, %30, %cst_14 [2] : vector<1x8x8xf32> to vector<1x8xf32>
    %32 = vector.shape_cast %31 : vector<1x8xf32> to vector<1x8x1xf32>
    %33 = tpu.reciprocal %32 {approx = true} : vector<1x8x1xf32> -> vector<1x8x1xf32>
    %34 = vector.broadcast %33 : vector<1x8x1xf32> to vector<1x8x8xf32>
    %35 = arith.mulf %30, %34 : vector<1x8x8xf32>
    "tpu.trace_start"() <{level = 10 : i32, message = "bqk,bkd->bqd"}> : () -> ()
    %cst_15 = arith.constant dense<0.000000e+00> : vector<1x8x64xf32>
    %36 = tpu.matmul %35, %20, %cst_15 {dimension_numbers = #tpu.dot_dimension_numbers<[2], [1], [1], [2], [0, 0, 0, 1, 1, 2], [0], [0]>} : vector<1x8x8xf32>, vector<1x8x64xf32>, vector<1x8x64xf32> -> vector<1x8x64xf32>
    "tpu.trace_stop"() : () -> ()
    %37 = vector.shape_cast %36 : vector<1x8x64xf32> to vector<8x64xf32>
    %c0_16 = arith.constant 0 : index
    %c0_17 = arith.constant 0 : index
    %38 = vector.load %arg17[%c0_16, %c0_17] : memref<8x256xf32, #tpu.memory_space<vmem>>, vector<8x64xf32>
    tpu.vector_store %arg17[%c0_16, %c0_17], %37 {strides = array<i32>} : memref<8x256xf32, #tpu.memory_space<vmem>>, vector<8x64xf32>,
    %39 = vector.extract_strided_slice %13 {offsets = [0, 0, 64], sizes = [1, 8, 64], strides = [1, 1, 1]} : vector<1x8x256xf32> to vector<1x8x64xf32>
    %40 = vector.extract_strided_slice %15 {offsets = [0, 0, 64], sizes = [1, 8, 64], strides = [1, 1, 1]} : vector<1x8x256xf32> to vector<1x8x64xf32>
    %41 = vector.extract_strided_slice %17 {offsets = [0, 0, 64], sizes = [1, 8, 64], strides = [1, 1, 1]} : vector<1x8x256xf32> to vector<1x8x64xf32>
    "tpu.trace_start"() <{level = 10 : i32, message = "bqd,bkd->bqk"}> : () -> ()
    %cst_18 = arith.constant dense<0.000000e+00> : vector<1x8x8xf32>
    %42 = tpu.matmul %39, %40, %cst_18 {dimension_numbers = #tpu.dot_dimension_numbers<[2], [2], [1], [1], [0, 0, 0, 1, 1, 1], [0], [0]>} : vector<1x8x64xf32>, vector<1x8x64xf32>, vector<1x8x8xf32> -> vector<1x8x8xf32>
    %cst_19 = arith.constant -1.000000e-10 : f32
    "tpu.trace_stop"() : () -> ()
    %43 = vector.shape_cast %4 : vector<1x1x8xi1> to vector<1x1x8xi1>
    %44 = vector.broadcast %43 : vector<1x1x8xi1> to vector<1x8x8xi1>
    %45 = vector.broadcast %cst_19 : f32 to vector<1x8x8xf32>
    %46 = arith.select %44, %45, %42 : vector<1x8x8xi1>, vector<1x8x8xf32>
    %cst_20 = arith.constant dense<0xFF800000> : vector<1x8xf32>
    %47 = vector.multi_reduction <maximumf>, %46, %cst_20 [2] : vector<1x8x8xf32> to vector<1x8xf32>
    %48 = vector.shape_cast %47 : vector<1x8xf32> to vector<1x8x1xf32>
    %49 = vector.broadcast %48 : vector<1x8x1xf32> to vector<1x8x8xf32>
    %50 = arith.subf %46, %49 : vector<1x8x8xf32>
    %51 = math.exp %50 : vector<1x8x8xf32>
    %cst_21 = arith.constant dense<0.000000e+00> : vector<1x8xf32>
    %52 = vector.multi_reduction <add>, %51, %cst_21 [2] : vector<1x8x8xf32> to vector<1x8xf32>
    %53 = vector.shape_cast %52 : vector<1x8xf32> to vector<1x8x1xf32>
    %54 = tpu.reciprocal %53 {approx = true} : vector<1x8x1xf32> -> vector<1x8x1xf32>
    %55 = vector.broadcast %54 : vector<1x8x1xf32> to vector<1x8x8xf32>
    %56 = arith.mulf %51, %55 : vector<1x8x8xf32>
    "tpu.trace_start"() <{level = 10 : i32, message = "bqk,bkd->bqd"}> : () -> ()
    %cst_22 = arith.constant dense<0.000000e+00> : vector<1x8x64xf32>
    %57 = tpu.matmul %56, %41, %cst_22 {dimension_numbers = #tpu.dot_dimension_numbers<[2], [1], [1], [2], [0, 0, 0, 1, 1, 2], [0], [0]>} : vector<1x8x8xf32>, vector<1x8x64xf32>, vector<1x8x64xf32> -> vector<1x8x64xf32>
    "tpu.trace_stop"() : () -> ()
    %58 = vector.shape_cast %57 : vector<1x8x64xf32> to vector<8x64xf32>
    %c0_23 = arith.constant 0 : index
    %c64 = arith.constant 64 : index
    %59 = vector.load %arg17[%c0_23, %c64] : memref<8x256xf32, #tpu.memory_space<vmem>>, vector<8x64xf32>
    tpu.vector_store %arg17[%c0_23, %c64], %58 {strides = array<i32>} : memref<8x256xf32, #tpu.memory_space<vmem>>, vector<8x64xf32>,
    %60 = vector.extract_strided_slice %13 {offsets = [0, 0, 128], sizes = [1, 8, 64], strides = [1, 1, 1]} : vector<1x8x256xf32> to vector<1x8x64xf32>
    %61 = vector.extract_strided_slice %15 {offsets = [0, 0, 128], sizes = [1, 8, 64], strides = [1, 1, 1]} : vector<1x8x256xf32> to vector<1x8x64xf32>
    %62 = vector.extract_strided_slice %17 {offsets = [0, 0, 128], sizes = [1, 8, 64], strides = [1, 1, 1]} : vector<1x8x256xf32> to vector<1x8x64xf32>
    "tpu.trace_start"() <{level = 10 : i32, message = "bqd,bkd->bqk"}> : () -> ()
    %cst_24 = arith.constant dense<0.000000e+00> : vector<1x8x8xf32>
    %63 = tpu.matmul %60, %61, %cst_24 {dimension_numbers = #tpu.dot_dimension_numbers<[2], [2], [1], [1], [0, 0, 0, 1, 1, 1], [0], [0]>} : vector<1x8x64xf32>, vector<1x8x64xf32>, vector<1x8x8xf32> -> vector<1x8x8xf32>
    %cst_25 = arith.constant -1.000000e-10 : f32
    "tpu.trace_stop"() : () -> ()
    %64 = vector.shape_cast %4 : vector<1x1x8xi1> to vector<1x1x8xi1>
    %65 = vector.broadcast %64 : vector<1x1x8xi1> to vector<1x8x8xi1>
    %66 = vector.broadcast %cst_25 : f32 to vector<1x8x8xf32>
    %67 = arith.select %65, %66, %63 : vector<1x8x8xi1>, vector<1x8x8xf32>
    %cst_26 = arith.constant dense<0xFF800000> : vector<1x8xf32>
    %68 = vector.multi_reduction <maximumf>, %67, %cst_26 [2] : vector<1x8x8xf32> to vector<1x8xf32>
    %69 = vector.shape_cast %68 : vector<1x8xf32> to vector<1x8x1xf32>
    %70 = vector.broadcast %69 : vector<1x8x1xf32> to vector<1x8x8xf32>
    %71 = arith.subf %67, %70 : vector<1x8x8xf32>
    %72 = math.exp %71 : vector<1x8x8xf32>
    %cst_27 = arith.constant dense<0.000000e+00> : vector<1x8xf32>
    %73 = vector.multi_reduction <add>, %72, %cst_27 [2] : vector<1x8x8xf32> to vector<1x8xf32>
    %74 = vector.shape_cast %73 : vector<1x8xf32> to vector<1x8x1xf32>
    %75 = tpu.reciprocal %74 {approx = true} : vector<1x8x1xf32> -> vector<1x8x1xf32>
    %76 = vector.broadcast %75 : vector<1x8x1xf32> to vector<1x8x8xf32>
    %77 = arith.mulf %72, %76 : vector<1x8x8xf32>
    "tpu.trace_start"() <{level = 10 : i32, message = "bqk,bkd->bqd"}> : () -> ()
    %cst_28 = arith.constant dense<0.000000e+00> : vector<1x8x64xf32>
    %78 = tpu.matmul %77, %62, %cst_28 {dimension_numbers = #tpu.dot_dimension_numbers<[2], [1], [1], [2], [0, 0, 0, 1, 1, 2], [0], [0]>} : vector<1x8x8xf32>, vector<1x8x64xf32>, vector<1x8x64xf32> -> vector<1x8x64xf32>
    "tpu.trace_stop"() : () -> ()
    %79 = vector.shape_cast %78 : vector<1x8x64xf32> to vector<8x64xf32>
    %c0_29 = arith.constant 0 : index
    %c128 = arith.constant 128 : index
    %80 = vector.load %arg17[%c0_29, %c128] : memref<8x256xf32, #tpu.memory_space<vmem>>, vector<8x64xf32>
    tpu.vector_store %arg17[%c0_29, %c128], %79 {strides = array<i32>} : memref<8x256xf32, #tpu.memory_space<vmem>>, vector<8x64xf32>,
    %81 = vector.extract_strided_slice %13 {offsets = [0, 0, 192], sizes = [1, 8, 64], strides = [1, 1, 1]} : vector<1x8x256xf32> to vector<1x8x64xf32>
    %82 = vector.extract_strided_slice %15 {offsets = [0, 0, 192], sizes = [1, 8, 64], strides = [1, 1, 1]} : vector<1x8x256xf32> to vector<1x8x64xf32>
    %83 = vector.extract_strided_slice %17 {offsets = [0, 0, 192], sizes = [1, 8, 64], strides = [1, 1, 1]} : vector<1x8x256xf32> to vector<1x8x64xf32>
    "tpu.trace_start"() <{level = 10 : i32, message = "bqd,bkd->bqk"}> : () -> ()
    %cst_30 = arith.constant dense<0.000000e+00> : vector<1x8x8xf32>
    %84 = tpu.matmul %81, %82, %cst_30 {dimension_numbers = #tpu.dot_dimension_numbers<[2], [2], [1], [1], [0, 0, 0, 1, 1, 1], [0], [0]>} : vector<1x8x64xf32>, vector<1x8x64xf32>, vector<1x8x8xf32> -> vector<1x8x8xf32>
    %cst_31 = arith.constant -1.000000e-10 : f32
    "tpu.trace_stop"() : () -> ()
    %85 = vector.shape_cast %4 : vector<1x1x8xi1> to vector<1x1x8xi1>
    %86 = vector.broadcast %85 : vector<1x1x8xi1> to vector<1x8x8xi1>
    %87 = vector.broadcast %cst_31 : f32 to vector<1x8x8xf32>
    %88 = arith.select %86, %87, %84 : vector<1x8x8xi1>, vector<1x8x8xf32>
    %cst_32 = arith.constant dense<0xFF800000> : vector<1x8xf32>
    %89 = vector.multi_reduction <maximumf>, %88, %cst_32 [2] : vector<1x8x8xf32> to vector<1x8xf32>
    %90 = vector.shape_cast %89 : vector<1x8xf32> to vector<1x8x1xf32>
    %91 = vector.broadcast %90 : vector<1x8x1xf32> to vector<1x8x8xf32>
    %92 = arith.subf %88, %91 : vector<1x8x8xf32>
    %93 = math.exp %92 : vector<1x8x8xf32>
    %cst_33 = arith.constant dense<0.000000e+00> : vector<1x8xf32>
    %94 = vector.multi_reduction <add>, %93, %cst_33 [2] : vector<1x8x8xf32> to vector<1x8xf32>
    %95 = vector.shape_cast %94 : vector<1x8xf32> to vector<1x8x1xf32>
    %96 = tpu.reciprocal %95 {approx = true} : vector<1x8x1xf32> -> vector<1x8x1xf32>
    %97 = vector.broadcast %96 : vector<1x8x1xf32> to vector<1x8x8xf32>
    %98 = arith.mulf %93, %97 : vector<1x8x8xf32>
    "tpu.trace_start"() <{level = 10 : i32, message = "bqk,bkd->bqd"}> : () -> ()
    %cst_34 = arith.constant dense<0.000000e+00> : vector<1x8x64xf32>
    %99 = tpu.matmul %98, %83, %cst_34 {dimension_numbers = #tpu.dot_dimension_numbers<[2], [1], [1], [2], [0, 0, 0, 1, 1, 2], [0], [0]>} : vector<1x8x8xf32>, vector<1x8x64xf32>, vector<1x8x64xf32> -> vector<1x8x64xf32>
    "tpu.trace_stop"() : () -> ()
    %100 = vector.shape_cast %99 : vector<1x8x64xf32> to vector<8x64xf32>
    %c0_35 = arith.constant 0 : index
    %c192 = arith.constant 192 : index
    %101 = vector.load %arg17[%c0_35, %c192] : memref<8x256xf32, #tpu.memory_space<vmem>>, vector<8x64xf32>
    tpu.vector_store %arg17[%c0_35, %c192], %100 {strides = array<i32>} : memref<8x256xf32, #tpu.memory_space<vmem>>, vector<8x64xf32>,
    %102 = vector.shape_cast %35 : vector<1x8x8xf32> to vector<1x1x8x8xf32>
    %103 = vector.shape_cast %56 : vector<1x8x8xf32> to vector<1x1x8x8xf32>
    %104 = vector.shape_cast %77 : vector<1x8x8xf32> to vector<1x1x8x8xf32>
    %105 = vector.shape_cast %98 : vector<1x8x8xf32> to vector<1x1x8x8xf32>
    %106 = tpu.concatenate %102, %103, %104, %105 in 1 : vector<1x1x8x8xf32>, vector<1x1x8x8xf32>, vector<1x1x8x8xf32>, vector<1x1x8x8xf32> -> vector<1x4x8x8xf32>
    %c0_36 = arith.constant 0 : index
    %c0_37 = arith.constant 0 : index
    %c0_38 = arith.constant 0 : index
    %c0_39 = arith.constant 0 : index
    %107 = vector.load %arg16[%c0_36, %c0_37, %c0_38, %c0_39] : memref<1x4x8x8xf32, #tpu.memory_space<vmem>>, vector<1x4x8x8xf32>
    tpu.vector_store %arg16[%c0_36, %c0_37, %c0_38, %c0_39], %106 {strides = array<i32>} : memref<1x4x8x8xf32, #tpu.memory_space<vmem>>, vector<1x4x8x8xf32>,
    %c0_40 = arith.constant 0 : index
    %c0_41 = arith.constant 0 : index
    %108 = vector.load %arg17[%c0_40, %c0_41] : memref<8x256xf32, #tpu.memory_space<vmem>>, vector<8x256xf32>
    %c0_42 = arith.constant 0 : index
    %c0_43 = arith.constant 0 : index
    %109 = vector.load %arg5[%c0_42, %c0_43] : memref<256x256xf32, #tpu.memory_space<vmem>>, vector<256x256xf32>
    %cst_44 = arith.constant dense<0.000000e+00> : vector<8x256xf32>
    %110 = tpu.matmul %108, %109, %cst_44 {dimension_numbers = #tpu.dot_dimension_numbers<[1], [0], [0], [1], [0, 0, 1, 1], [], []>} : vector<8x256xf32>, vector<256x256xf32>, vector<8x256xf32> -> vector<8x256xf32>
    %c0_45 = arith.constant 0 : index
    %c0_46 = arith.constant 0 : index
    %111 = vector.load %arg6[%c0_45, %c0_46] : memref<1x256xf32, #tpu.memory_space<vmem>>, vector<1x256xf32>
    %112 = vector.broadcast %111 : vector<1x256xf32> to vector<8x256xf32>
    %113 = arith.addf %110, %112 : vector<8x256xf32>
    %114 = arith.addf %1, %113 : vector<8x256xf32>
    %c0_47 = arith.constant 0 : index
    %c0_48 = arith.constant 0 : index
    %115 = vector.load %arg7[%c0_47, %c0_48] : memref<1x256xf32, #tpu.memory_space<vmem>>, vector<1x256xf32>
    %c0_49 = arith.constant 0 : index
    %c0_50 = arith.constant 0 : index
    %116 = vector.load %arg8[%c0_49, %c0_50] : memref<1x256xf32, #tpu.memory_space<vmem>>, vector<1x256xf32>
    %cst_51 = arith.constant dense<0.000000e+00> : vector<8xf32>
    %117 = vector.multi_reduction <add>, %114, %cst_51 [1] : vector<8x256xf32> to vector<8xf32>
    %118 = vector.shape_cast %117 : vector<8xf32> to vector<8x1xf32>
    %cst_52 = arith.constant 2.560000e+02 : f32
    %119 = vector.broadcast %cst_52 : f32 to vector<8x1xf32>
    %120 = arith.divf %118, %119 : vector<8x1xf32>
    %121 = vector.broadcast %120 : vector<8x1xf32> to vector<8x256xf32>
    %122 = arith.subf %114, %121 : vector<8x256xf32>
    %123 = arith.mulf %122, %122 : vector<8x256xf32>
    %cst_53 = arith.constant dense<0.000000e+00> : vector<8xf32>
    %124 = vector.multi_reduction <add>, %123, %cst_53 [1] : vector<8x256xf32> to vector<8xf32>
    %125 = vector.shape_cast %124 : vector<8xf32> to vector<8x1xf32>
    %cst_54 = arith.constant 2.560000e+02 : f32
    %126 = vector.broadcast %cst_54 : f32 to vector<8x1xf32>
    %127 = arith.divf %125, %126 : vector<8x1xf32>
    %128 = vector.broadcast %120 : vector<8x1xf32> to vector<8x256xf32>
    %129 = arith.subf %114, %128 : vector<8x256xf32>
    %cst_55 = arith.constant 9.99999974E-6 : f32
    %130 = vector.broadcast %cst_55 : f32 to vector<8x1xf32>
    %131 = arith.addf %127, %130 : vector<8x1xf32>
    %132 = math.rsqrt %131 : vector<8x1xf32>
    %133 = vector.broadcast %132 : vector<8x1xf32> to vector<8x256xf32>
    %134 = arith.mulf %129, %133 : vector<8x256xf32>
    %135 = vector.broadcast %115 : vector<1x256xf32> to vector<8x256xf32>
    %136 = arith.mulf %134, %135 : vector<8x256xf32>
    %137 = vector.broadcast %116 : vector<1x256xf32> to vector<8x256xf32>
    %138 = arith.addf %136, %137 : vector<8x256xf32>
    %c0_56 = arith.constant 0 : index
    %c0_57 = arith.constant 0 : index
    %139 = vector.load %arg9[%c0_56, %c0_57] : memref<256x512xf32, #tpu.memory_space<vmem>>, vector<256x512xf32>
    %cst_58 = arith.constant dense<0.000000e+00> : vector<8x512xf32>
    %140 = tpu.matmul %138, %139, %cst_58 {dimension_numbers = #tpu.dot_dimension_numbers<[1], [0], [0], [1], [0, 0, 1, 1], [], []>} : vector<8x256xf32>, vector<256x512xf32>, vector<8x512xf32> -> vector<8x512xf32>
    %c0_59 = arith.constant 0 : index
    %c0_60 = arith.constant 0 : index
    %141 = vector.load %arg10[%c0_59, %c0_60] : memref<1x512xf32, #tpu.memory_space<vmem>>, vector<1x512xf32>
    %142 = vector.broadcast %141 : vector<1x512xf32> to vector<8x512xf32>
    %143 = arith.addf %140, %142 : vector<8x512xf32>
    %cst_61 = arith.constant 0.000000e+00 : f32
    %144 = vector.broadcast %cst_61 : f32 to vector<8x512xf32>
    %145 = arith.maximumf %143, %144 : vector<8x512xf32>
    %c0_62 = arith.constant 0 : index
    %c0_63 = arith.constant 0 : index
    %146 = vector.load %arg11[%c0_62, %c0_63] : memref<512x256xf32, #tpu.memory_space<vmem>>, vector<512x256xf32>
    %cst_64 = arith.constant dense<0.000000e+00> : vector<8x256xf32>
    %147 = tpu.matmul %145, %146, %cst_64 {dimension_numbers = #tpu.dot_dimension_numbers<[1], [0], [0], [1], [0, 0, 1, 1], [], []>} : vector<8x512xf32>, vector<512x256xf32>, vector<8x256xf32> -> vector<8x256xf32>
    %c0_65 = arith.constant 0 : index
    %c0_66 = arith.constant 0 : index
    %148 = vector.load %arg12[%c0_65, %c0_66] : memref<1x256xf32, #tpu.memory_space<vmem>>, vector<1x256xf32>
    %149 = vector.broadcast %148 : vector<1x256xf32> to vector<8x256xf32>
    %150 = arith.addf %147, %149 : vector<8x256xf32>
    %151 = arith.addf %138, %150 : vector<8x256xf32>
    %c0_67 = arith.constant 0 : index
    %c0_68 = arith.constant 0 : index
    %152 = vector.load %arg13[%c0_67, %c0_68] : memref<1x256xf32, #tpu.memory_space<vmem>>, vector<1x256xf32>
    %c0_69 = arith.constant 0 : index
    %c0_70 = arith.constant 0 : index
    %153 = vector.load %arg14[%c0_69, %c0_70] : memref<1x256xf32, #tpu.memory_space<vmem>>, vector<1x256xf32>
    %cst_71 = arith.constant dense<0.000000e+00> : vector<8xf32>
    %154 = vector.multi_reduction <add>, %151, %cst_71 [1] : vector<8x256xf32> to vector<8xf32>
    %155 = vector.shape_cast %154 : vector<8xf32> to vector<8x1xf32>
    %cst_72 = arith.constant 2.560000e+02 : f32
    %156 = vector.broadcast %cst_72 : f32 to vector<8x1xf32>
    %157 = arith.divf %155, %156 : vector<8x1xf32>
    %158 = vector.broadcast %157 : vector<8x1xf32> to vector<8x256xf32>
    %159 = arith.subf %151, %158 : vector<8x256xf32>
    %160 = arith.mulf %159, %159 : vector<8x256xf32>
    %cst_73 = arith.constant dense<0.000000e+00> : vector<8xf32>
    %161 = vector.multi_reduction <add>, %160, %cst_73 [1] : vector<8x256xf32> to vector<8xf32>
    %162 = vector.shape_cast %161 : vector<8xf32> to vector<8x1xf32>
    %cst_74 = arith.constant 2.560000e+02 : f32
    %163 = vector.broadcast %cst_74 : f32 to vector<8x1xf32>
    %164 = arith.divf %162, %163 : vector<8x1xf32>
    %165 = vector.broadcast %157 : vector<8x1xf32> to vector<8x256xf32>
    %166 = arith.subf %151, %165 : vector<8x256xf32>
    %cst_75 = arith.constant 9.99999974E-6 : f32
    %167 = vector.broadcast %cst_75 : f32 to vector<8x1xf32>
    %168 = arith.addf %164, %167 : vector<8x1xf32>
    %169 = math.rsqrt %168 : vector<8x1xf32>
    %170 = vector.broadcast %169 : vector<8x1xf32> to vector<8x256xf32>
    %171 = arith.mulf %166, %170 : vector<8x256xf32>
    %172 = vector.broadcast %152 : vector<1x256xf32> to vector<8x256xf32>
    %173 = arith.mulf %171, %172 : vector<8x256xf32>
    %174 = vector.broadcast %153 : vector<1x256xf32> to vector<8x256xf32>
    %175 = arith.addf %173, %174 : vector<8x256xf32>
    %176 = vector.shape_cast %175 : vector<8x256xf32> to vector<1x8x256xf32>
    %c0_76 = arith.constant 0 : index
    %c0_77 = arith.constant 0 : index
    %c0_78 = arith.constant 0 : index
    %177 = vector.load %arg15[%c0_76, %c0_77, %c0_78] : memref<1x8x256xf32, #tpu.memory_space<vmem>>, vector<1x8x256xf32>
    tpu.vector_store %arg15[%c0_76, %c0_77, %c0_78], %176 {strides = array<i32>} : memref<1x8x256xf32, #tpu.memory_space<vmem>>, vector<1x8x256xf32>,
    return
  }
  func.func @transform_0(%arg0: i32) -> (i32, i32, i32) {
    %c0_i32 = arith.constant 0 : i32
    %c0_i32_0 = arith.constant 0 : i32
    %c0_i32_1 = arith.constant 0 : i32
    return %arg0, %c0_i32, %c0_i32_0 : i32, i32, i32
  }
  func.func @transform_1(%arg0: i32) -> (i32, i32, i32) {
    %c0_i32 = arith.constant 0 : i32
    %c0_i32_0 = arith.constant 0 : i32
    %c0_i32_1 = arith.constant 0 : i32
    return %arg0, %c0_i32, %c0_i32_0 : i32, i32, i32
  }
  func.func @transform_2(%arg0: i32) -> (i32, i32) {
    %c0_i32 = arith.constant 0 : i32
    %c0_i32_0 = arith.constant 0 : i32
    %c0_i32_1 = arith.constant 0 : i32
    return %c0_i32, %c0_i32_0 : i32, i32
  }
  func.func @transform_3(%arg0: i32) -> (i32, i32) {
    %c0_i32 = arith.constant 0 : i32
    %c0_i32_0 = arith.constant 0 : i32
    %c0_i32_1 = arith.constant 0 : i32
    return %c0_i32, %c0_i32_0 : i32, i32
  }
  func.func @transform_4(%arg0: i32) -> (i32, i32) {
    %c0_i32 = arith.constant 0 : i32
    %c0_i32_0 = arith.constant 0 : i32
    %c0_i32_1 = arith.constant 0 : i32
    return %c0_i32, %c0_i32_0 : i32, i32
  }
  func.func @transform_5(%arg0: i32) -> (i32, i32) {
    %c0_i32 = arith.constant 0 : i32
    %c0_i32_0 = arith.constant 0 : i32
    %c0_i32_1 = arith.constant 0 : i32
    return %c0_i32, %c0_i32_0 : i32, i32
  }
  func.func @transform_6(%arg0: i32) -> (i32, i32) {
    %c0_i32 = arith.constant 0 : i32
    %c0_i32_0 = arith.constant 0 : i32
    %c0_i32_1 = arith.constant 0 : i32
    return %c0_i32, %c0_i32_0 : i32, i32
  }
  func.func @transform_7(%arg0: i32) -> (i32, i32) {
    %c0_i32 = arith.constant 0 : i32
    %c0_i32_0 = arith.constant 0 : i32
    %c0_i32_1 = arith.constant 0 : i32
    return %c0_i32, %c0_i32_0 : i32, i32
  }
  func.func @transform_8(%arg0: i32) -> (i32, i32) {
    %c0_i32 = arith.constant 0 : i32
    %c0_i32_0 = arith.constant 0 : i32
    %c0_i32_1 = arith.constant 0 : i32
    return %c0_i32, %c0_i32_0 : i32, i32
  }
  func.func @transform_9(%arg0: i32) -> (i32, i32) {
    %c0_i32 = arith.constant 0 : i32
    %c0_i32_0 = arith.constant 0 : i32
    %c0_i32_1 = arith.constant 0 : i32
    return %c0_i32, %c0_i32_0 : i32, i32
  }
  func.func @transform_10(%arg0: i32) -> (i32, i32) {
    %c0_i32 = arith.constant 0 : i32
    %c0_i32_0 = arith.constant 0 : i32
    %c0_i32_1 = arith.constant 0 : i32
    return %c0_i32, %c0_i32_0 : i32, i32
  }
  func.func @transform_11(%arg0: i32) -> (i32, i32) {
    %c0_i32 = arith.constant 0 : i32
    %c0_i32_0 = arith.constant 0 : i32
    %c0_i32_1 = arith.constant 0 : i32
    return %c0_i32, %c0_i32_0 : i32, i32
  }
  func.func @transform_12(%arg0: i32) -> (i32, i32) {
    %c0_i32 = arith.constant 0 : i32
    %c0_i32_0 = arith.constant 0 : i32
    %c0_i32_1 = arith.constant 0 : i32
    return %c0_i32, %c0_i32_0 : i32, i32
  }
  func.func @transform_13(%arg0: i32) -> (i32, i32) {
    %c0_i32 = arith.constant 0 : i32
    %c0_i32_0 = arith.constant 0 : i32
    %c0_i32_1 = arith.constant 0 : i32
    return %c0_i32, %c0_i32_0 : i32, i32
  }
  func.func @transform_14(%arg0: i32) -> (i32, i32, i32) {
    %c0_i32 = arith.constant 0 : i32
    %c0_i32_0 = arith.constant 0 : i32
    %c0_i32_1 = arith.constant 0 : i32
    return %arg0, %c0_i32, %c0_i32_0 : i32, i32, i32
  }
  func.func @transform_15(%arg0: i32) -> (i32, i32, i32, i32) {
    %c0_i32 = arith.constant 0 : i32
    %c0_i32_0 = arith.constant 0 : i32
    %c0_i32_1 = arith.constant 0 : i32
    %c0_i32_2 = arith.constant 0 : i32
    return %arg0, %c0_i32, %c0_i32_0, %c0_i32_1 : i32, i32, i32, i32
  }
}

</mosaic_0001>

<bundles_post_ra>
// kernel: encoder_forward.1
= control target key start
LH: loop header
LB: loop body
LE: loop exit
PB: predicated region body
PF: predicated region fallthrough
CT: control target
= control target key end

     0   :  { %s3730_s0 = inlined_call_operand.vmem [shape: f32[2,8,256], index: 0, kind: input, shape index: {}]   ;;  %s3731_s1 = inlined_call_operand.vmem [shape: f32[2,1,8], index: 1, kind: input, shape index: {}]   ;;  %s3732_s2 = inlined_call_operand.vmem [shape: f32[256,768], index: 2, kind: input, shape index: {}]   ;;  %s3733_s3 = inlined_call_operand.vmem [shape: f32[1,768], index: 3, kind: input, shape index: {}]   ;;  %s3734_s4 = inlined_call_operand.vmem [shape: f32[256,256], index: 4, kind: input, shape index: {}]   ;;  %s3735_s5 = inlined_call_operand.vmem [shape: f32[1,256], index: 5, kind: input, shape index: {}]   ;;  %s3736_s6 = inlined_call_operand.vmem [shape: f32[1,256], index: 6, kind: input, shape index: {}]   ;;  %s3737_s7 = inlined_call_operand.vmem [shape: f32[1,256], index: 7, kind: input, shape index: {}]   ;;  %s3738_s8 = inlined_call_operand.hbm [shape: f32[256,512], index: 8, kind: input, shape index: {}]   ;;  %s3739_s9 = inlined_call_operand.vmem [shape: f32[1,512], index: 9, kind: input, shape index: {}]   ;;  %s3740_s10 = inlined_call_operand.hbm [shape: f32[512,256], index: 10, kind: input, shape index: {}]   ;;  %s3741_s11 = inlined_call_operand.vmem [shape: f32[1,256], index: 11, kind: input, shape index: {}]   ;;  %s3742_s12 = inlined_call_operand.vmem [shape: f32[1,256], index: 12, kind: input, shape index: {}]   ;;  %s3743_s13 = inlined_call_operand.vmem [shape: f32[1,256], index: 13, kind: input, shape index: {}]   ;;  %s3744_s14 = inlined_call_operand.hbm [shape: f32[2,8,256], index: 14, kind: output, shape index: {0}]   ;;  %s3745_s15 = inlined_call_operand.hbm [shape: f32[2,4,8,8], index: 15, kind: output, shape index: {1}]  }
   0x1   :  { %3752 = sst [smem:[#allocation21_spill]] %s3730_s0 }
   0x2   :  { %3753 = sst [smem:[#allocation22_spill]] %s3731_s1 }
   0x3   :  { %3754 = sst [smem:[#allocation23_spill]] %s3732_s2 }
   0x4   :  { %3755 = sst [smem:[#allocation24_spill]] %s3738_s8 }
   0x5   :  { %21 = vsyncpa [#allocation4], 0 }
   0x6   :  { %22 = vsyncpa [#allocation7], 0 }
   0x7   :  { %23 = vsyncpa [#allocation5], 0 }
   0x8   :  { %25 = vsyncpa [#allocation5 + $0x1], 0 }
   0x9   :  { %26 = vsyncpa [#allocation10], 0 }
   0xa   :  { %28 = vsyncpa [#allocation10 + $0x1], 0  ;;  %s2673_s18 = smov 0   ;;  %s2675_s19 = smov 0  }
   0xb   :  { %s2677_s20 = smov 0   ;;  %s2679_s21 = smov 0  }
   0xc LB: > { %3756 = sst [smem:[#allocation15_spill]] %s2568_s18  ;;  %s2694_s22 = sadd.s32 4294967295, %s2580_s21   ;;  %s2580_s21 = sphi %s2679_s21, %s3774_s21   ;;  %s2576_s20 = sphi %s2677_s20, %s3776_s20   ;;  %s2572_s19 = sphi %s2675_s19, %s3778_s19   ;;  %s2568_s18 = sphi %s2673_s18, %s3777_s18  }
   0xd   : > { %3757 = sst [smem:[#allocation16_spill]] %s2576_s20  ;;  %s2287_s23 = sadd.s32 4294967294, %s2580_s21  }
   0xe   : > { %3758 = sst [smem:[#allocation17_spill]] %s2580_s21  ;;  %s2698_s24 = sadd.s32 1, %s2580_s21  }
   0xf   : > { %3759 = sst [smem:[#allocation18_spill]] %s2698_s24  ;;  %s345_s25 = sadd.s32 1, %s2576_s20 }
  0x10   : > { %s342_s26 = ssub.s32 %s2580_s21, %s2698_s24  ;;  %p355_p0 = scmp.ne.s32.totalorder %s2576_s20, %s2572_s19 }
  0x11   : > { %p343_p1 = scmp.eq.s32.totalorder %s342_s26, 0  ;;  %p356_p2 = scmp.eq.s32.totalorder %s2694_s22, 1 }
  0x12   : > { %p361_p3 = scmp.ne.s32.totalorder %s2572_s19, %s2568_s18  ;;  %p362_p4 = scmp.eq.s32.totalorder %s2287_s23, 1 }
  0x13   : > { %s2709_s27 = scalar_select %p343_p1, %s2576_s20, %s345_s25  }
  0x14   : > { %p2711_p5 = por %p356_p2, %p355_p0  ;;  %p2715_p6 = por %p362_p4, %p361_p3 }
  0x15   : > { %3760 = sst [smem:[#allocation19_spill]] %s2709_s27  ;;  %p2288_p7 = scmp.ge.s32.totalorder %s2580_s21, 1 }
  0x16   : > { %s3762_s29 = scalar_select %p2715_p6, 1, 0 }
  0x17   : > { %p395_p8 = scmp.lt.s32.totalorder %s2580_s21, 3  ;;  %p2348_p9 = scmp.eq.s32.totalorder %s2694_s22, 0 }
  0x18   : > { %3763 = sst [smem:[#allocation20_spill]] %s3762_s29  ;;  %s2582_s25 = smov [#allocation3]  }
  0x19   : > { %p2722_p10 = pnand %p2288_p7, %p395_p8  ;;  %s3765_s8 = sld [smem:[#allocation24_spill]] }
  0x1a   : > { %s426_s26 = sshll.u32 %s2582_s25, 4  ;;  %s441_s24 = sshll.u32 %s3740_s10, 4  ;;  %s427_s26 = int_to_ptr.vmem [resolvable:$true] %s426_s26  ;;  %s442_s24 = int_to_ptr.hbm [resolvable:$true] %s441_s24 }
  0x1b   : > { %p2334_p11 = pneg %p2722_p10  ;;  %s2583_s29 = smov 512  }
  0x1c   : > { %s2584_s18 = smov 32   ;;  %s2585_s21 = smov [#allocation6]  }
  0x1d   : > { %p2335_p12 = pnand %p2348_p9, %p2334_p11  ;;  %s443_s16 = sshll.u32 %s2585_s21, 4  ;;  %s444_s16 = int_to_ptr.vmem [resolvable:$true] %s443_s16 }
  0x1e   : > { %s2586_s17 = smov 256   ;;  %482 = sbr.rel (%p2722_p10) target bundleno = 1984 (0x7c0), region = 76 }
  0x1f   : > { %s424_s23 = sshll.u32 %s3765_s8, 4  ;;  %s2587_s8 = smov 16   ;;  %s425_s23 = int_to_ptr.hbm [resolvable:$true] %s424_s23 }
  0x20   : > { %2337 = dma.hbm_to_vmem [thread:$0]  (!%p2335_p12), %s425_s23, 16384, %s427_s26, [#allocation4], %s2583_s29, %s2583_s29, %s2584_s18  }
  0x21   : > { %2340 = dma.hbm_to_vmem [thread:$0]  (!%p2335_p12), %s442_s24, 16384, %s444_s16, [#allocation7], %s2586_s17, %s2586_s17, %s2587_s8  }
  0x23   : > { %2551 = dma.done.wait (%p2348_p9), [#allocation4], 16384  }
  0x24   : > { %2553 = vsyncadd (%p2348_p9), [#allocation4], 4294950912 }
  0x25   : > { %2555 = dma.done.wait (%p2348_p9), [#allocation7], 16384  }
  0x26   : > { %2557 = vsyncadd (%p2348_p9), [#allocation7], 4294950912  ;;  %s3766_s2 = sld [smem:[#allocation23_spill]]  ;;  %p544_p13 = scmp.lt.s32.totalorder %s2694_s22, 1  ;;  %vm1004_vm0 = vcmask 523264   ;;  %vm1035_vm3 = vcmask 64512  }
  0x27   : > { %s3767_s0 = sld [smem:[#allocation21_spill]]  ;;  %s2588_s21 = smov 64   ;;  %vm1142_vm4 = vcmask 1048064  }
  0x28   : > { %s3026_s8 = scalar_select %p544_p13, %s2694_s22, 1 }
  0x29   : > { %s3768_s1 = sld [smem:[#allocation22_spill]]  ;;  %s2321_s27 = sshll.u32 %s2694_s22, 5 }
  0x2a   : > { %s2319_s30 = sshll.u32 %s3026_s8, 4 }
  0x2c   : > { %v646_v0 = vld [vmem:[%s3766_s2 + $0x2d0] sm:$0xff]  ;;  %v647_v1 = vld [vmem:[%s3766_s2 + $0x2d8] sm:$0xff]  ;;  %v640_v2 = vld [vmem:[%s3766_s2 + $0x2a0] sm:$0xff] }
  0x2d   : > { %762 = vmatpush.msra.mxu0 %v646_v0  ;;  %802 = vmatpush.msra.mxu2 %v647_v1  ;;  %v742_v3 = vld [vmem:[%s3766_s2 + $0x5d0] sm:$0xff]  ;;  %v641_v4 = vld [vmem:[%s3766_s2 + $0x2a8] sm:$0xff]  ;;  %v743_v5 = vld [vmem:[%s3766_s2 + $0x5d8] sm:$0xff]  ;;  %s548_s16 = scalar_lea.vmem %s3767_s0, %s2319_s30  ;;  %s2157_s30 = scalar_lea.hbm %s3745_s15, %s2321_s27 }
  0x2e   : > { %782 = vmatpush.msra.mxu1 %v742_v3  ;;  %822 = vmatpush.msra.mxu3 %v743_v5  ;;  %v634_v6 = vld [vmem:[%s3766_s2 + $0x270] sm:$0xff]  ;;  %v736_v7 = vld [vmem:[%s3766_s2 + $0x5a0] sm:$0xff]  ;;  %v635_v8 = vld [vmem:[%s3766_s2 + $0x278] sm:$0xff]  ;;  %s2160_s26 = sshll.u32 %s2157_s30, 4  ;;  %s2498_s0 = scalar_lea.hbm %s3745_s15, 64  ;;  %s2161_s26 = int_to_ptr.hbm [resolvable:$true] %s2160_s26 }
  0x2f   : > { %763 = vmatpush.msra.mxu0 %v640_v2  ;;  %803 = vmatpush.msra.mxu2 %v641_v4  ;;  %v737_v9 = vld [vmem:[%s3766_s2 + $0x5a8] sm:$0xff]  ;;  %v730_v10 = vld [vmem:[%s3766_s2 + $0x570] sm:$0xff]  ;;  %v628_v11 = vld [vmem:[%s3766_s2 + $0x240] sm:$0xff]  ;;  %s2492_s17 = sshra.s32 %s2161_s26, 4  ;;  %s2493_s17 = int_to_ptr.hbm [resolvable:$true] %s2492_s17 }
  0x30   : > { %783 = vmatpush.msra.mxu1 %v736_v7  ;;  %823 = vmatpush.msra.mxu3 %v737_v9  ;;  %v629_v12 = vld [vmem:[%s3766_s2 + $0x248] sm:$0xff]  ;;  %v731_v13 = vld [vmem:[%s3766_s2 + $0x578] sm:$0xff]  ;;  %v724_v14 = vld [vmem:[%s3766_s2 + $0x540] sm:$0xff]  ;;  %s2494_s18 = scalar_lea.hbm %s2493_s17, 32  ;;  %p2499_p3 = scmp.lt.s32.totalorder %s2493_s17, %s3745_s15 }
  0x31   : > { %764 = vmatpush.msra.mxu0 %v634_v6  ;;  %804 = vmatpush.msra.mxu2 %v635_v8  ;;  %v725_v15 = vld [vmem:[%s3766_s2 + $0x548] sm:$0xff]  ;;  %v622_v16 = vld [vmem:[%s3766_s2 + $0x210] sm:$0xff]  ;;  %v623_v17 = vld [vmem:[%s3766_s2 + $0x218] sm:$0xff]  ;;  %p2495_p0 = scmp.ne.s32.totalorder %s2493_s17, %s2494_s18  ;;  %p2500_p4 = scmp.lt.s32.totalorder %s2498_s0, %s2494_s18 }
  0x32   : > { %784 = vmatpush.msra.mxu1 %v730_v10  ;;  %824 = vmatpush.msra.mxu3 %v731_v13  ;;  %v718_v18 = vld [vmem:[%s3766_s2 + $0x510] sm:$0xff]  ;;  %v719_v19 = vld [vmem:[%s3766_s2 + $0x518] sm:$0xff]  ;;  %v616_v20 = vld [vmem:[%s3766_s2 + $0x1e0] sm:$0xff] }
  0x33   : > { %765 = vmatpush.msra.mxu0 %v628_v11  ;;  %805 = vmatpush.msra.mxu2 %v629_v12  ;;  %v617_v21 = vld [vmem:[%s3766_s2 + $0x1e8] sm:$0xff]  ;;  %v712_v22 = vld [vmem:[%s3766_s2 + $0x4e0] sm:$0xff]  ;;  %v610_v24 = vld [vmem:[%s3766_s2 + $0x1b0] sm:$0xff]  ;;  %p2496_p1 = pnand %p2495_p0, %p2711_p5  ;;  %p2501_p7 = por %p2500_p4, %p2499_p3 }
  0x34   : > { %785 = vmatpush.msra.mxu1 %v724_v14  ;;  %825 = vmatpush.msra.mxu3 %v725_v15  ;;  %v713_v23 = vld [vmem:[%s3766_s2 + $0x4e8] sm:$0xff]  ;;  %v611_v25 = vld [vmem:[%s3766_s2 + $0x1b8] sm:$0xff]  ;;  %v706_v26 = vld [vmem:[%s3766_s2 + $0x4b0] sm:$0xff] }
  0x35   : > { %766 = vmatpush.msra.mxu0 %v622_v16  ;;  %806 = vmatpush.msra.mxu2 %v623_v17  ;;  %v707_v27 = vld [vmem:[%s3766_s2 + $0x4b8] sm:$0xff]  ;;  %v604_v28 = vld [vmem:[%s3766_s2 + $0x180] sm:$0xff]  ;;  %v605_v29 = vld [vmem:[%s3766_s2 + $0x188] sm:$0xff]  ;;  %p2497_p2 = pneg %p2496_p1 }
  0x36   : > { %786 = vmatpush.msra.mxu1 %v718_v18  ;;  %826 = vmatpush.msra.mxu3 %v719_v19  ;;  %v700_v30 = vld [vmem:[%s3766_s2 + $0x480] sm:$0xff]  ;;  %v701_v31 = vld [vmem:[%s3766_s2 + $0x488] sm:$0xff]  ;;  %v598_v32 = vld [vmem:[%s3766_s2 + $0x150] sm:$0xff] }
  0x37   : > { %767 = vmatpush.msra.mxu0 %v616_v20  ;;  %807 = vmatpush.msra.mxu2 %v617_v21  ;;  %v599_v33 = vld [vmem:[%s3766_s2 + $0x158] sm:$0xff]  ;;  %v694_v34 = vld [vmem:[%s3766_s2 + $0x450] sm:$0xff]  ;;  %v592_v36 = vld [vmem:[%s3766_s2 + $0x120] sm:$0xff]  ;;  %p2502_p8 = pnand %p2501_p7, %p2497_p2 }
  0x38   : > { %787 = vmatpush.msra.mxu1 %v712_v22  ;;  %827 = vmatpush.msra.mxu3 %v713_v23  ;;  %v695_v35 = vld [vmem:[%s3766_s2 + $0x458] sm:$0xff]  ;;  %v593_v37 = vld [vmem:[%s3766_s2 + $0x128] sm:$0xff]  ;;  %v688_v38 = vld [vmem:[%s3766_s2 + $0x420] sm:$0xff] }
  0x39   : > { %768 = vmatpush.msra.mxu0 %v610_v24  ;;  %808 = vmatpush.msra.mxu2 %v611_v25  ;;  %v689_v39 = vld [vmem:[%s3766_s2 + $0x428] sm:$0xff]  ;;  %v586_v40 = vld [vmem:[%s3766_s2 + $0xf0] sm:$0xff]  ;;  %v587_v41 = vld [vmem:[%s3766_s2 + $0xf8] sm:$0xff] }
  0x3a   : > { %788 = vmatpush.msra.mxu1 %v706_v26  ;;  %828 = vmatpush.msra.mxu3 %v707_v27  ;;  %v682_v42 = vld [vmem:[%s3766_s2 + $0x3f0] sm:$0xff]  ;;  %v683_v43 = vld [vmem:[%s3766_s2 + $0x3f8] sm:$0xff]  ;;  %v580_v44 = vld [vmem:[%s3766_s2 + $0xc0] sm:$0xff] }
  0x3b   : > { %769 = vmatpush.msra.mxu0 %v604_v28  ;;  %809 = vmatpush.msra.mxu2 %v605_v29  ;;  %v581_v45 = vld [vmem:[%s3766_s2 + $0xc8] sm:$0xff]  ;;  %v676_v46 = vld [vmem:[%s3766_s2 + $0x3c0] sm:$0xff]  ;;  %v574_v48 = vld [vmem:[%s3766_s2 + $0x90] sm:$0xff] }
  0x3c   : > { %789 = vmatpush.msra.mxu1 %v700_v30  ;;  %829 = vmatpush.msra.mxu3 %v701_v31  ;;  %v677_v47 = vld [vmem:[%s3766_s2 + $0x3c8] sm:$0xff]  ;;  %v575_v49 = vld [vmem:[%s3766_s2 + $0x98] sm:$0xff]  ;;  %v670_v50 = vld [vmem:[%s3766_s2 + $0x390] sm:$0xff] }
  0x3d   : > { %770 = vmatpush.msra.mxu0 %v598_v32  ;;  %810 = vmatpush.msra.mxu2 %v599_v33  ;;  %v671_v51 = vld [vmem:[%s3766_s2 + $0x398] sm:$0xff]  ;;  %v568_v52 = vld [vmem:[%s3766_s2 + $0x60] sm:$0xff]  ;;  %v569_v53 = vld [vmem:[%s3766_s2 + $0x68] sm:$0xff] }
  0x3e   : > { %790 = vmatpush.msra.mxu1 %v694_v34  ;;  %830 = vmatpush.msra.mxu3 %v695_v35  ;;  %v664_v54 = vld [vmem:[%s3766_s2 + $0x360] sm:$0xff]  ;;  %v665_v55 = vld [vmem:[%s3766_s2 + $0x368] sm:$0xff]  ;;  %v562_v56 = vld [vmem:[%s3766_s2 + $0x30] sm:$0xff] }
  0x3f   : > { %771 = vmatpush.msra.mxu0 %v592_v36  ;;  %811 = vmatpush.msra.mxu2 %v593_v37  ;;  %v563_v57 = vld [vmem:[%s3766_s2 + $0x38] sm:$0xff]  ;;  %v658_v58 = vld [vmem:[%s3766_s2 + $0x330] sm:$0xff]  ;;  %v556_v60 = vld [vmem:[%s3766_s2] sm:$0xff] }
  0x40   : > { %791 = vmatpush.msra.mxu1 %v688_v38  ;;  %831 = vmatpush.msra.mxu3 %v689_v39  ;;  %v659_v59 = vld [vmem:[%s3766_s2 + $0x338] sm:$0xff]  ;;  %v557_v61 = vld [vmem:[%s3766_s2 + $0x8] sm:$0xff]  ;;  %v648_v62 = vld [vmem:[%s3766_s2 + $0x2e0] sm:$0xff] }
  0x41   : > { %772 = vmatpush.msra.mxu0 %v586_v40  ;;  %812 = vmatpush.msra.mxu2 %v587_v41  ;;  %v649_v63 = vld [vmem:[%s3766_s2 + $0x2e8] sm:$0xff]  ;;  %v652_v0 = vld [vmem:[%s3766_s2 + $0x300] sm:$0xff]  ;;  %v642_v2 = vld [vmem:[%s3766_s2 + $0x2b0] sm:$0xff] }
  0x42   : > { %792 = vmatpush.msra.mxu1 %v682_v42  ;;  %832 = vmatpush.msra.mxu3 %v683_v43  ;;  %v653_v1 = vld [vmem:[%s3766_s2 + $0x308] sm:$0xff]  ;;  %v744_v3 = vld [vmem:[%s3766_s2 + $0x5e0] sm:$0xff]  ;;  %v643_v4 = vld [vmem:[%s3766_s2 + $0x2b8] sm:$0xff] }
  0x43   : > { %773 = vmatpush.msra.mxu0 %v580_v44  ;;  %813 = vmatpush.msra.mxu2 %v581_v45  ;;  %v745_v5 = vld [vmem:[%s3766_s2 + $0x5e8] sm:$0xff]  ;;  %v636_v6 = vld [vmem:[%s3766_s2 + $0x280] sm:$0xff]  ;;  %v738_v7 = vld [vmem:[%s3766_s2 + $0x5b0] sm:$0xff] }
  0x44   : > { %793 = vmatpush.msra.mxu1 %v676_v46  ;;  %833 = vmatpush.msra.mxu3 %v677_v47  ;;  %v637_v8 = vld [vmem:[%s3766_s2 + $0x288] sm:$0xff]  ;;  %v739_v9 = vld [vmem:[%s3766_s2 + $0x5b8] sm:$0xff]  ;;  %v630_v10 = vld [vmem:[%s3766_s2 + $0x250] sm:$0xff] }
  0x45   : > { %774 = vmatpush.msra.mxu0 %v574_v48  ;;  %814 = vmatpush.msra.mxu2 %v575_v49  ;;  %v732_v11 = vld [vmem:[%s3766_s2 + $0x580] sm:$0xff]  ;;  %v631_v12 = vld [vmem:[%s3766_s2 + $0x258] sm:$0xff]  ;;  %v733_v13 = vld [vmem:[%s3766_s2 + $0x588] sm:$0xff] }
  0x46   : > { %794 = vmatpush.msra.mxu1 %v670_v50  ;;  %834 = vmatpush.msra.mxu3 %v671_v51  ;;  %v624_v14 = vld [vmem:[%s3766_s2 + $0x220] sm:$0xff]  ;;  %v726_v15 = vld [vmem:[%s3766_s2 + $0x550] sm:$0xff]  ;;  %v625_v16 = vld [vmem:[%s3766_s2 + $0x228] sm:$0xff] }
  0x47   : > { %775 = vmatpush.msra.mxu0 %v568_v52  ;;  %815 = vmatpush.msra.mxu2 %v569_v53  ;;  %v727_v17 = vld [vmem:[%s3766_s2 + $0x558] sm:$0xff]  ;;  %v618_v18 = vld [vmem:[%s3766_s2 + $0x1f0] sm:$0xff]  ;;  %v720_v19 = vld [vmem:[%s3766_s2 + $0x520] sm:$0xff] }
  0x48   : > { %795 = vmatpush.msra.mxu1 %v664_v54  ;;  %835 = vmatpush.msra.mxu3 %v665_v55  ;;  %v619_v20 = vld [vmem:[%s3766_s2 + $0x1f8] sm:$0xff]  ;;  %v721_v21 = vld [vmem:[%s3766_s2 + $0x528] sm:$0xff]  ;;  %v612_v22 = vld [vmem:[%s3766_s2 + $0x1c0] sm:$0xff] }
  0x49   : > { %776 = vmatpush.msra.mxu0 %v562_v56  ;;  %816 = vmatpush.msra.mxu2 %v563_v57  ;;  %v714_v23 = vld [vmem:[%s3766_s2 + $0x4f0] sm:$0xff]  ;;  %v613_v24 = vld [vmem:[%s3766_s2 + $0x1c8] sm:$0xff]  ;;  %v715_v25 = vld [vmem:[%s3766_s2 + $0x4f8] sm:$0xff] }
  0x4a   : > { %796 = vmatpush.msra.mxu1 %v658_v58  ;;  %836 = vmatpush.msra.mxu3 %v659_v59  ;;  %v606_v26 = vld [vmem:[%s3766_s2 + $0x190] sm:$0xff]  ;;  %v708_v27 = vld [vmem:[%s3766_s2 + $0x4c0] sm:$0xff]  ;;  %v607_v28 = vld [vmem:[%s3766_s2 + $0x198] sm:$0xff] }
  0x4b   : > { %777 = vmatpush.msra.mxu0 %v556_v60  ;;  %817 = vmatpush.msra.mxu2 %v557_v61  ;;  %v709_v29 = vld [vmem:[%s3766_s2 + $0x4c8] sm:$0xff]  ;;  %v600_v30 = vld [vmem:[%s3766_s2 + $0x160] sm:$0xff]  ;;  %v702_v31 = vld [vmem:[%s3766_s2 + $0x490] sm:$0xff] }
  0x4c   : > { %797 = vmatpush.msra.mxu1 %v652_v0  ;;  %837 = vmatpush.msra.mxu3 %v653_v1  ;;  %v601_v32 = vld [vmem:[%s3766_s2 + $0x168] sm:$0xff]  ;;  %v703_v33 = vld [vmem:[%s3766_s2 + $0x498] sm:$0xff]  ;;  %v594_v34 = vld [vmem:[%s3766_s2 + $0x130] sm:$0xff] }
  0x4d   : > { %842 = vmatpush.msrb.mxu0 %v648_v62  ;;  %882 = vmatpush.msrb.mxu2 %v649_v63  ;;  %v696_v35 = vld [vmem:[%s3766_s2 + $0x460] sm:$0xff]  ;;  %v595_v36 = vld [vmem:[%s3766_s2 + $0x138] sm:$0xff]  ;;  %v697_v37 = vld [vmem:[%s3766_s2 + $0x468] sm:$0xff] }
  0x4e   : > { %862 = vmatpush.msrb.mxu1 %v744_v3  ;;  %902 = vmatpush.msrb.mxu3 %v745_v5  ;;  %v588_v38 = vld [vmem:[%s3766_s2 + $0x100] sm:$0xff]  ;;  %v690_v39 = vld [vmem:[%s3766_s2 + $0x430] sm:$0xff]  ;;  %v589_v40 = vld [vmem:[%s3766_s2 + $0x108] sm:$0xff] }
  0x4f   : > { %843 = vmatpush.msrb.mxu0 %v642_v2  ;;  %883 = vmatpush.msrb.mxu2 %v643_v4  ;;  %v691_v41 = vld [vmem:[%s3766_s2 + $0x438] sm:$0xff]  ;;  %v582_v42 = vld [vmem:[%s3766_s2 + $0xd0] sm:$0xff]  ;;  %v684_v43 = vld [vmem:[%s3766_s2 + $0x400] sm:$0xff] }
  0x50   : > { %863 = vmatpush.msrb.mxu1 %v738_v7  ;;  %903 = vmatpush.msrb.mxu3 %v739_v9  ;;  %v583_v44 = vld [vmem:[%s3766_s2 + $0xd8] sm:$0xff]  ;;  %v685_v45 = vld [vmem:[%s3766_s2 + $0x408] sm:$0xff]  ;;  %v3086_v46 = vld [vmem:[%s548_s16] sm:$0xff] }
  0x51   : > { %844 = vmatpush.msrb.mxu0 %v636_v6  ;;  %884 = vmatpush.msrb.mxu2 %v637_v8  ;;  %v576_v47 = vld [vmem:[%s3766_s2 + $0xa0] sm:$0xff]  ;;  %v678_v48 = vld [vmem:[%s3766_s2 + $0x3d0] sm:$0xff]  ;;  %v577_v49 = vld [vmem:[%s3766_s2 + $0xa8] sm:$0xff] }
  0x52   : > { %864 = vmatpush.msrb.mxu1 %v732_v11  ;;  %904 = vmatpush.msrb.mxu3 %v733_v13  ;;  %v679_v50 = vld [vmem:[%s3766_s2 + $0x3d8] sm:$0xff]  ;;  %v3102_v51 = vld [vmem:[%s548_s16 + $0x8] sm:$0xff]  ;;  %v570_v52 = vld [vmem:[%s3766_s2 + $0x70] sm:$0xff]  ;;  %s551_s16 = scalar_lea.vmem %s3768_s1, %s3026_s8  ;;  %s3394_s8 = sand.u32 1, %s2572_s19  }
  0x53   : > { %845 = vmatpush.msrb.mxu0 %v630_v10  ;;  %885 = vmatpush.msrb.mxu2 %v631_v12  ;;  %v672_v53 = vld [vmem:[%s3766_s2 + $0x3a0] sm:$0xff]  ;;  %v571_v54 = vld [vmem:[%s3766_s2 + $0x78] sm:$0xff]  ;;  %v673_v55 = vld [vmem:[%s3766_s2 + $0x3a8] sm:$0xff]  ;;  %s2296_s20 = sshll.u32 %s3394_s8, 5 }
  0x54   : > { %865 = vmatpush.msrb.mxu1 %v726_v15  ;;  %905 = vmatpush.msrb.mxu3 %v727_v17  ;;  %v564_v56 = vld [vmem:[%s3766_s2 + $0x40] sm:$0xff]  ;;  %v666_v57 = vld [vmem:[%s3766_s2 + $0x370] sm:$0xff]  ;;  %v565_v58 = vld [vmem:[%s3766_s2 + $0x48] sm:$0xff]  ;;  %s3399_s24 = scalar_lea.vmem [#allocation9], %s2296_s20 }
  0x55   : > { %846 = vmatpush.msrb.mxu0 %v624_v14  ;;  %886 = vmatpush.msrb.mxu2 %v625_v16  ;;  %v667_v59 = vld [vmem:[%s3766_s2 + $0x378] sm:$0xff]  ;;  %v558_v60 = vld [vmem:[%s3766_s2 + $0x10] sm:$0xff]  ;;  %v660_v61 = vld [vmem:[%s3766_s2 + $0x340] sm:$0xff]  ;;  %s2158_s25 = sshll.u32 %s3399_s24, 4  ;;  %s2159_s25 = int_to_ptr.vmem [resolvable:$true] %s2158_s25 }
  0x56   : > { %866 = vmatpush.msrb.mxu1 %v720_v19  ;;  %906 = vmatpush.msrb.mxu3 %v721_v21  ;;  %v559_v62 = vld [vmem:[%s3766_s2 + $0x18] sm:$0xff]  ;;  %v661_v63 = vld [vmem:[%s3766_s2 + $0x348] sm:$0xff]  ;;  %v654_v0 = vld [vmem:[%s3766_s2 + $0x310] sm:$0xff] }
  0x57   : > { %847 = vmatpush.msrb.mxu0 %v618_v18  ;;  %887 = vmatpush.msrb.mxu2 %v619_v20  ;;  %v655_v1 = vld [vmem:[%s3766_s2 + $0x318] sm:$0xff]  ;;  %v650_v2 = vld [vmem:[%s3766_s2 + $0x2f0] sm:$0xff]  ;;  %v644_v3 = vld [vmem:[%s3766_s2 + $0x2c0] sm:$0xff] }
  0x58   : > { %867 = vmatpush.msrb.mxu1 %v714_v23  ;;  %907 = vmatpush.msrb.mxu3 %v715_v25  ;;  %v638_v4 = vld [vmem:[%s3766_s2 + $0x290] sm:$0xff]  ;;  %v632_v5 = vld [vmem:[%s3766_s2 + $0x260] sm:$0xff]  ;;  %v651_v18 = vld [vmem:[%s3766_s2 + $0x2f8] sm:$0xff] }
  0x59   : > { %848 = vmatpush.msrb.mxu0 %v612_v22  ;;  %888 = vmatpush.msrb.mxu2 %v613_v24  ;;  %v626_v6 = vld [vmem:[%s3766_s2 + $0x230] sm:$0xff]  ;;  %v620_v7 = vld [vmem:[%s3766_s2 + $0x200] sm:$0xff]  ;;  %v645_v19 = vld [vmem:[%s3766_s2 + $0x2c8] sm:$0xff] }
  0x5a   : > { %868 = vmatpush.msrb.mxu1 %v708_v27  ;;  %908 = vmatpush.msrb.mxu3 %v709_v29  ;;  %v614_v8 = vld [vmem:[%s3766_s2 + $0x1d0] sm:$0xff]  ;;  %v608_v9 = vld [vmem:[%s3766_s2 + $0x1a0] sm:$0xff]  ;;  %v747_v20 = vld [vmem:[%s3766_s2 + $0x5f8] sm:$0xff] }
  0x5b   : > { %849 = vmatpush.msrb.mxu0 %v606_v26  ;;  %889 = vmatpush.msrb.mxu2 %v607_v28  ;;  %v602_v10 = vld [vmem:[%s3766_s2 + $0x170] sm:$0xff]  ;;  %v596_v11 = vld [vmem:[%s3766_s2 + $0x140] sm:$0xff]  ;;  %v741_v21 = vld [vmem:[%s3766_s2 + $0x5c8] sm:$0xff] }
  0x5c   : > { %869 = vmatpush.msrb.mxu1 %v702_v31  ;;  %909 = vmatpush.msrb.mxu3 %v703_v33  ;;  %v590_v12 = vld [vmem:[%s3766_s2 + $0x110] sm:$0xff]  ;;  %v584_v13 = vld [vmem:[%s3766_s2 + $0xe0] sm:$0xff]  ;;  %v639_v22 = vld [vmem:[%s3766_s2 + $0x298] sm:$0xff] }
  0x5d   : > { %850 = vmatpush.msrb.mxu0 %v600_v30  ;;  %890 = vmatpush.msrb.mxu2 %v601_v32  ;;  %v578_v14 = vld [vmem:[%s3766_s2 + $0xb0] sm:$0xff]  ;;  %v572_v15 = vld [vmem:[%s3766_s2 + $0x80] sm:$0xff]  ;;  %v735_v23 = vld [vmem:[%s3766_s2 + $0x598] sm:$0xff] }
  0x5e   : > { %870 = vmatpush.msrb.mxu1 %v696_v35  ;;  %910 = vmatpush.msrb.mxu3 %v697_v37  ;;  %v566_v16 = vld [vmem:[%s3766_s2 + $0x50] sm:$0xff]  ;;  %v560_v17 = vld [vmem:[%s3766_s2 + $0x20] sm:$0xff]  ;;  %v633_v28 = vld [vmem:[%s3766_s2 + $0x268] sm:$0xff] }
  0x5f   : > { %851 = vmatpush.msrb.mxu0 %v594_v34  ;;  %891 = vmatpush.msrb.mxu2 %v595_v36  ;;  %v746_v24 = vld [vmem:[%s3766_s2 + $0x5f0] sm:$0xff]  ;;  %v740_v26 = vld [vmem:[%s3766_s2 + $0x5c0] sm:$0xff]  ;;  %v729_v29 = vld [vmem:[%s3766_s2 + $0x568] sm:$0xff] }
  0x60   : > { %871 = vmatpush.msrb.mxu1 %v690_v39  ;;  %911 = vmatpush.msrb.mxu3 %v691_v41  ;;  %v3228_v27 = vld [vmem:[%s3733_s3] sm:$0x3f]  ;;  %v734_v30 = vld [vmem:[%s3766_s2 + $0x590] sm:$0xff]  ;;  %v627_v32 = vld [vmem:[%s3766_s2 + $0x238] sm:$0xff] }
  0x61   : > { %852 = vmatpush.msrb.mxu0 %v588_v38  ;;  %892 = vmatpush.msrb.mxu2 %v589_v40  ;;  %v723_v33 = vld [vmem:[%s3766_s2 + $0x538] sm:$0xff]  ;;  %v750_v34 = vperm.slane %v3228_v27, 0  ;;  %v728_v35 = vld [vmem:[%s3766_s2 + $0x560] sm:$0xff]  ;;  %v621_v36 = vld [vmem:[%s3766_s2 + $0x208] sm:$0xff]  ;;  %v752_v40 = vperm.slane %v3228_v27, 2 }
  0x62   : > { %872 = vmatpush.msrb.mxu1 %v684_v43  ;;  %912 = vmatpush.msrb.mxu3 %v685_v45  ;;  %v717_v37 = vld [vmem:[%s3766_s2 + $0x508] sm:$0xff]  ;;  %v722_v39 = vld [vmem:[%s3766_s2 + $0x530] sm:$0xff]  ;;  %v615_v41 = vld [vmem:[%s3766_s2 + $0x1d8] sm:$0xff] }
  0x63   : > { %853 = vmatpush.msrb.mxu0 %v582_v42  ;;  %893 = vmatpush.msrb.mxu2 %v583_v44  ;;  %v711_v42 = vld [vmem:[%s3766_s2 + $0x4d8] sm:$0xff]  ;;  %v716_v44 = vld [vmem:[%s3766_s2 + $0x500] sm:$0xff] }
  0x64   : > { %778 = vmatmul.f32.vlgmr.msra.gmra.mxu0 %v3086_v46  ;;  %818 = vmatmul.f32.vlgmr.msra.gmra.mxu2 %v3086_v46 }
  0x65   : > { %854 = vmatpush.msrb.mxu0 %v576_v47  ;;  %873 = vmatpush.msrb.mxu1 %v678_v48  ;;  %v609_v47 = vld [vmem:[%s3766_s2 + $0x1a8] sm:$0xff] }
  0x66   : > { %894 = vmatpush.msrb.mxu2 %v577_v49  ;;  %913 = vmatpush.msrb.mxu3 %v679_v50  ;;  %v705_v48 = vld [vmem:[%s3766_s2 + $0x4a8] sm:$0xff]  ;;  %v710_v50 = vld [vmem:[%s3766_s2 + $0x4d0] sm:$0xff] }
  0x67   : > { %798 = vmatmul.f32.vlgmr.msra.gmra.mxu1 %v3102_v51  ;;  %838 = vmatmul.f32.vlgmr.msra.gmra.mxu3 %v3102_v51 }
  0x68   : > { %855 = vmatpush.msrb.mxu0 %v570_v52  ;;  %874 = vmatpush.msrb.mxu1 %v672_v53  ;;  %v603_v53 = vld [vmem:[%s3766_s2 + $0x178] sm:$0xff] }
  0x69   : > { %895 = vmatpush.msrb.mxu2 %v571_v54  ;;  %914 = vmatpush.msrb.mxu3 %v673_v55  ;;  %v699_v54 = vld [vmem:[%s3766_s2 + $0x478] sm:$0xff] }
  0x6a   : > { %856 = vmatpush.msrb.mxu0 %v564_v56  ;;  %875 = vmatpush.msrb.mxu1 %v666_v57  ;;  %v751_v56 = vperm.slane %v3228_v27, 1 }
  0x6b   : > { %896 = vmatpush.msrb.mxu2 %v565_v58  ;;  %915 = vmatpush.msrb.mxu3 %v667_v59  ;;  %v753_v59 = vperm.slane %v3228_v27, 3 }
  0x6c   : > { %857 = vmatpush.msrb.mxu0 %v558_v60  ;;  %876 = vmatpush.msrb.mxu1 %v660_v61  ;;  %v597_v60 = vld [vmem:[%s3766_s2 + $0x148] sm:$0xff] }
  0x6d   : > { %897 = vmatpush.msrb.mxu2 %v559_v62  ;;  %916 = vmatpush.msrb.mxu3 %v661_v63  ;;  %v693_v61 = vld [vmem:[%s3766_s2 + $0x448] sm:$0xff]  ;;  %v704_v62 = vld [vmem:[%s3766_s2 + $0x4a0] sm:$0xff]  ;;  %v591_v63 = vld [vmem:[%s3766_s2 + $0x118] sm:$0xff] }
  0x6e   : > { %858 = vmatmul.f32.vlgmr.msrb.gmra.mxu0 %v3086_v46  ;;  %898 = vmatmul.f32.vlgmr.msrb.gmra.mxu2 %v3086_v46 }
  0x6f   : > { %877 = vmatpush.msrb.mxu1 %v654_v0  ;;  %917 = vmatpush.msrb.mxu3 %v655_v1 }
  0x70   : > { %878 = vmatmul.f32.vlgmr.msrb.gmra.mxu1 %v3102_v51  ;;  %918 = vmatmul.f32.vlgmr.msrb.gmra.mxu3 %v3102_v51 }
  0x71   : > { %922 = vmatpush.msra.mxu0 %v650_v2  ;;  %962 = vmatpush.msra.mxu2 %v651_v18  ;;  %v669_v18 = vld [vmem:[%s3766_s2 + $0x388] sm:$0xff] }
  0x72   : > { %982 = vmatpush.msra.mxu3 %v747_v20  ;;  %942 = vmatpush.msra.mxu1 %v746_v24  ;;  %v561_v20 = vld [vmem:[%s3766_s2 + $0x28] sm:$0xff]  ;;  %v668_v24 = vld [vmem:[%s3766_s2 + $0x380] sm:$0xff] }
  0x73   : > { %923 = vmatpush.msra.mxu0 %v644_v3  ;;  %963 = vmatpush.msra.mxu2 %v645_v19  ;;  %v687_v3 = vld [vmem:[%s3766_s2 + $0x418] sm:$0xff]  ;;  %v680_v19 = vld [vmem:[%s3766_s2 + $0x3e0] sm:$0xff] }
  0x74   : > { %983 = vmatpush.msra.mxu3 %v741_v21  ;;  %943 = vmatpush.msra.mxu1 %v740_v26  ;;  %v663_v21 = vld [vmem:[%s3766_s2 + $0x358] sm:$0xff]  ;;  %v656_v26 = vld [vmem:[%s3766_s2 + $0x320] sm:$0xff] }
  0x75   : > { %924 = vmatpush.msra.mxu0 %v638_v4  ;;  %964 = vmatpush.msra.mxu2 %v639_v22  ;;  %v698_v4 = vld [vmem:[%s3766_s2 + $0x470] sm:$0xff] }
  0x76   : > { %984 = vmatpush.msra.mxu3 %v735_v23  ;;  %944 = vmatpush.msra.mxu1 %v734_v30  ;;  %v674_v22 = vld [vmem:[%s3766_s2 + $0x3b0] sm:$0xff]  ;;  %v657_v23 = vld [vmem:[%s3766_s2 + $0x328] sm:$0xff] }
  0x77   : > { %925 = vmatpush.msra.mxu0 %v632_v5  ;;  %965 = vmatpush.msra.mxu2 %v633_v28  ;;  %v554_v28 = vld [vmem:[%s551_s16] sm:$0x1] }
  0x78   : > { %985 = vmatpush.msra.mxu3 %v729_v29  ;;  %945 = vmatpush.msra.mxu1 %v728_v35  ;;  %vm555_vm1 = vcmp.eq.f32.partialorder %v554_v28, 0.0 }
  0x79   : > { %926 = vmatpush.msra.mxu0 %v626_v6  ;;  %966 = vmatpush.msra.mxu2 %v627_v32  ;;  %v585_v6 = vld [vmem:[%s3766_s2 + $0xe8] sm:$0xff] }
  0x7a   : > { %986 = vmatpush.msra.mxu3 %v723_v33  ;;  %946 = vmatpush.msra.mxu1 %v722_v39 }
  0x7b   : > { %927 = vmatpush.msra.mxu0 %v620_v7  ;;  %967 = vmatpush.msra.mxu2 %v621_v36  ;;  %v1310_v36 = vld [vmem:[%s3734_s4 + $0xd0] sm:$0xff] }
  0x7c   : > { %987 = vmatpush.msra.mxu3 %v717_v37  ;;  %947 = vmatpush.msra.mxu1 %v716_v44 }
  0x7d   : > { %928 = vmatpush.msra.mxu0 %v614_v8  ;;  %968 = vmatpush.msra.mxu2 %v615_v41  ;;  %v754_v41 = vperm.slane %v3228_v27, 4 }
  0x7e   : > { %988 = vmatpush.msra.mxu3 %v711_v42  ;;  %948 = vmatpush.msra.mxu1 %v710_v50  ;;  %v755_v42 = vperm.slane %v3228_v27, 5 }
  0x7f   : > { %929 = vmatpush.msra.mxu0 %v608_v9  ;;  %969 = vmatpush.msra.mxu2 %v609_v47  ;;  %v579_v9 = vld [vmem:[%s3766_s2 + $0xb8] sm:$0xff] }
  0x80   : > { %989 = vmatpush.msra.mxu3 %v705_v48  ;;  %949 = vmatpush.msra.mxu1 %v704_v62 }
  0x81   : > { %930 = vmatpush.msra.mxu0 %v602_v10  ;;  %970 = vmatpush.msra.mxu2 %v603_v53  ;;  %v681_v10 = vld [vmem:[%s3766_s2 + $0x3e8] sm:$0xff] }
  0x82   : > { %990 = vmatpush.msra.mxu3 %v699_v54  ;;  %950 = vmatpush.msra.mxu1 %v698_v4 }
  0x83   : > { %931 = vmatpush.msra.mxu0 %v596_v11  ;;  %971 = vmatpush.msra.mxu2 %v597_v60 }
  0x84   : > { %991 = vmatpush.msra.mxu3 %v693_v61 }
  0x85   : > { %932 = vmatpush.msra.mxu0 %v590_v12  ;;  %972 = vmatpush.msra.mxu2 %v591_v63  ;;  %v692_v12 = vld [vmem:[%s3766_s2 + $0x440] sm:$0xff] }
  0x86   : > { %992 = vmatpush.msra.mxu3 %v687_v3  ;;  %951 = vmatpush.msra.mxu1 %v692_v12 }
  0x87   : > { %933 = vmatpush.msra.mxu0 %v584_v13  ;;  %973 = vmatpush.msra.mxu2 %v585_v6  ;;  %v573_v13 = vld [vmem:[%s3766_s2 + $0x88] sm:$0xff] }
  0x88   : > { %993 = vmatpush.msra.mxu3 %v681_v10 }
  0x89   : > { %934 = vmatpush.msra.mxu0 %v578_v14  ;;  %v675_v14 = vld [vmem:[%s3766_s2 + $0x3b8] sm:$0xff]  ;;  %974 = vmatpush.msra.mxu2 %v579_v9 }
  0x8a   : > { %994 = vmatpush.msra.mxu3 %v675_v14 }
  0x8b   : > { %935 = vmatpush.msra.mxu0 %v572_v15  ;;  %v686_v15 = vld [vmem:[%s3766_s2 + $0x410] sm:$0xff]  ;;  %975 = vmatpush.msra.mxu2 %v573_v13 }
  0x8c   : > { %952 = vmatpush.msra.mxu1 %v686_v15  ;;  %995 = vmatpush.msra.mxu3 %v669_v18 }
  0x8d   : > { %936 = vmatpush.msra.mxu0 %v566_v16  ;;  %v567_v16 = vld [vmem:[%s3766_s2 + $0x58] sm:$0xff] }
  0x8e   : > { %976 = vmatpush.msra.mxu2 %v567_v16  ;;  %953 = vmatpush.msra.mxu1 %v680_v19 }
  0x8f   : > { %937 = vmatpush.msra.mxu0 %v560_v17  ;;  %996 = vmatpush.msra.mxu3 %v663_v21 }
  0x90   : > { %938 = vmatmul.f32.vlgmr.msra.gmra.mxu0 %v3086_v46  ;;  %977 = vmatpush.msra.mxu2 %v561_v20 }
  0x91   : > { %978 = vmatmul.f32.vlgmr.msra.gmra.mxu2 %v3086_v46  ;;  %954 = vmatpush.msra.mxu1 %v674_v22 }
  0x92   : > { %997 = vmatpush.msra.mxu3 %v657_v23 }
  0x93   : > { %955 = vmatpush.msra.mxu1 %v668_v24  ;;  %998 = vmatmul.f32.vlgmr.msra.gmra.mxu3 %v3102_v51 }
  0xe1   : > { %v779_v25 = vpop.f32.mrf.mxu0 }
  0xe2   : > { %v780_v43 = vadd.f32 %v779_v25, %v750_v34  ;;  %v662_v25 = vld [vmem:[%s3766_s2 + $0x350] sm:$0xff] }
  0xe3   : > { %956 = vmatpush.msra.mxu1 %v662_v25 }
  0xe4   : > { %v799_v31 = vpop.f32.mrf.mxu1 }
  0xe5   : > { %v800_v55 = vadd.f32 %v799_v31, %v780_v43  ;;  %957 = vmatpush.msra.mxu1 %v656_v26  ;;  %v2589_v31 = vmov 0  }
  0xe6   : > { %958 = vmatmul.f32.vlgmr.msra.gmra.mxu1 %v3102_v51  ;;  %v1031_v32 = vsel %vm555_vm1, 1, %v2589_v31 }
  0xe7   : > { %v819_v38 = vpop.f32.mrf.mxu2  ;;  %v1002_v0 = vmul.f32 0.0625, %v800_v55  ;;  %v1032_v35 = vperm.slane %v1031_v32, 0  ;;  %v1314_v32 = vld [vmem:[%s3734_s4 + $0xf0] sm:$0xff] }
  0xe8   : > { %v820_v1 = vadd.f32 %v819_v38, %v751_v56 }
  0xe9   : > { %vm3372_vm2 = vcmp.eq.s32.totalorder %v1032_v35, 1  ;;  %v1313_v35 = vld [vmem:[%s3734_s4 + $0xe8] sm:$0xff] }
  0xea   : > { %v839_v45 = vpop.f32.mrf.mxu3 }
  0xeb   : > { %v859_v49 = vpop.f32.mrf.mxu0  ;;  %v840_v11 = vadd.f32 %v839_v45, %v820_v1 }
  0xec   : > { %v860_v52 = vadd.f32 %v859_v49, %v752_v40 }
  0xed   : > { %v879_v57 = vpop.f32.mrf.mxu1  ;;  %v1003_v17 = vmul.f32 0.0625, %v840_v11 }
  0xee   : > { %v880_v58 = vadd.f32 %v879_v57, %v860_v52 }
  0xf0   : > { %1073 = vrot.lane.b32.xlu0 %v880_v58, %s2588_s21  ;;  %2299 = vmatpush.xpose.msk.msrb.mxu0 %vm1004_vm0, %v880_v58 }
  0xf1   : > { %v899_v2 = vpop.f32.mrf.mxu2 }
  0xf2   : > { %v900_v5 = vadd.f32 %v899_v2, %v753_v59 }
  0xf3   : > { %v919_v7 = vpop.f32.mrf.mxu3  ;;  %2300 = vmatmul.msk.f32.vlgmr.msrb.gmra.mxu0 %vm1004_vm0, %v1002_v0 }
  0xf4   : > { %v920_v8 = vadd.f32 %v919_v7, %v900_v5 }
  0xf6   : > { %1208 = vrot.lane.b32.xlu1 %v920_v8, %s2588_s21  ;;  %2305 = vmatpush.xpose.msk.msra.mxu0 %vm1004_vm0, %v920_v8 }
  0xf8   : > { %1071 = vrot.lane.b32.xlu0 %v1002_v0, %s2588_s21 }
  0xfa   : > { %1354 = vmatpush.msrb.mxu0 %v1314_v32  ;;  %v1320_v32 = vld [vmem:[%s3734_s4 + $0x120] sm:$0xff] }
  0xfb   : > { %2306 = vmatmul.msk.f32.vlgmr.msra.gmra.mxu0 %vm1004_vm0, %v1003_v17 }
  0xfe   : > { %1206 = vrot.lane.b32.xlu1 %v1003_v17, %s2588_s21 }
 0x10d   : > { %v939_v30 = vpop.f32.mrf.mxu0 }
 0x10e   : > { %v940_v44 = vadd.f32 %v939_v30, %v754_v41  ;;  %v1307_v41 = vld [vmem:[%s3734_s4 + $0xb8] sm:$0xff] }
 0x114   : > { %v979_v43 = vpop.f32.mrf.mxu2 }
 0x115   : > { %v980_v45 = vadd.f32 %v979_v43, %v755_v42  ;;  %v1304_v42 = vld [vmem:[%s3734_s4 + $0xa0] sm:$0xff]  ;;  %v1305_v43 = vld [vmem:[%s3734_s4 + $0xa8] sm:$0xff] }
 0x116   : > { %v999_v49 = vpop.f32.mrf.mxu3 }
 0x117   : > { %v1000_v50 = vadd.f32 %v999_v49, %v980_v45  ;;  %v1303_v45 = vld [vmem:[%s3734_s4 + $0x98] sm:$0xff]  ;;  %v1298_v49 = vld [vmem:[%s3734_s4 + $0x70] sm:$0xff] }
 0x162   : > { %v1074_v29 = vpop.permute.xlu0 %1073 }
 0x163   : > { %2302 = vmatpush.xpose.msk.msrb.mxu2 %vm1004_vm0, %v1074_v29  ;;  %v959_v47 = vpop.f32.mrf.mxu1 }
 0x164   : > { %v960_v48 = vadd.f32 %v959_v47, %v940_v44  ;;  %v1302_v44 = vld [vmem:[%s3734_s4 + $0x90] sm:$0xff]  ;;  %v1300_v47 = vld [vmem:[%s3734_s4 + $0x80] sm:$0xff] }
 0x166   : > { %1065 = vmatpush.msrb.mxu1 %v960_v48 }
 0x168   : > { %v1209_v33 = vpop.permute.xlu1 %1208  ;;  %1200 = vmatpush.msra.mxu1 %v1000_v50 }
 0x169   : > { %2308 = vmatpush.xpose.msk.msra.mxu2 %vm1004_vm0, %v1209_v33  ;;  %v1315_v33 = vld [vmem:[%s3734_s4 + $0xf8] sm:$0xff] }
 0x16a   : > { %v1072_v34 = vpop.permute.xlu0 %1071 }
 0x16b   : > { %2303 = vmatmul.msk.f32.vlgmr.msrb.gmra.mxu2 %vm1004_vm0, %v1072_v34  ;;  %v1312_v34 = vld [vmem:[%s3734_s4 + $0xe0] sm:$0xff] }
 0x16c   : > { %1355 = vmatpush.msrb.mxu0 %v1312_v34  ;;  %v1318_v34 = vld [vmem:[%s3734_s4 + $0x110] sm:$0xff] }
 0x16d   : > { %1394 = vmatpush.msrb.mxu2 %v1315_v33  ;;  %v1321_v33 = vld [vmem:[%s3734_s4 + $0x128] sm:$0xff] }
 0x16e   : > { %1356 = vmatpush.msrb.mxu0 %v1310_v36  ;;  %v1316_v36 = vld [vmem:[%s3734_s4 + $0x100] sm:$0xff] }
 0x16f   : > { %1395 = vmatpush.msrb.mxu2 %v1313_v35  ;;  %v1319_v35 = vld [vmem:[%s3734_s4 + $0x118] sm:$0xff] }
 0x170   : > { %v1028_v37 = vpop.f32.mrf.mxu0  ;;  %v1207_v39 = vpop.permute.xlu1 %1206 }
 0x171   : > { %v1034_v38 = vsel %vm3372_vm2, -1e-10, %v1028_v37  ;;  %v1311_v37 = vld [vmem:[%s3734_s4 + $0xd8] sm:$0xff] }
 0x172   : > { %v1036_v40 = vsel %vm1035_vm3, %v1034_v38, -inf  ;;  %1396 = vmatpush.msrb.mxu2 %v1311_v37  ;;  %v1317_v37 = vld [vmem:[%s3734_s4 + $0x108] sm:$0xff] }
 0x173   : > { %2309 = vmatmul.msk.f32.vlgmr.msra.gmra.mxu2 %vm1004_vm0, %v1207_v39  ;;  %1037 = vmax.xlane.f32.xlu0 %v1036_v40  ;;  %v1309_v39 = vld [vmem:[%s3734_s4 + $0xc8] sm:$0xff]  ;;  %v1306_v40 = vld [vmem:[%s3734_s4 + $0xb0] sm:$0xff] }
 0x174   : > { %1397 = vmatpush.msrb.mxu2 %v1309_v39 }
 0x176   : > { %1398 = vmatpush.msrb.mxu2 %v1307_v41  ;;  %v1348_v41 = vld [vmem:[%s3735_s5] sm:$0x3] }
 0x178   : > { %v1167_v62 = vpop.f32.mrf.mxu0  ;;  %1399 = vmatpush.msrb.mxu2 %v1305_v43 }
 0x179   : > { %v1170_v63 = vsel %vm3372_vm2, -1e-10, %v1167_v62  ;;  %v1288_v62 = vld [vmem:[%s3734_s4 + $0x20] sm:$0xff] }
 0x17a   : > { %v1171_v0 = vsel %vm1035_vm3, %v1170_v63, -inf  ;;  %1400 = vmatpush.msrb.mxu2 %v1303_v45 }
 0x1e6   : > { %v1038_v52 = vpop.xlane.xlu0 %1037 }
 0x1e7   : > { %v1039_v53 = vsub.f32 %v1034_v38, %v1038_v52  ;;  %v1308_v38 = vld [vmem:[%s3734_s4 + $0xc0] sm:$0xff] }
 0x1e8   : > { %1357 = vmatpush.msrb.mxu0 %v1308_v38  ;;  %v1296_v52 = vld [vmem:[%s3734_s4 + $0x60] sm:$0xff] }
 0x1e9   : > { %v1040_v54 = vmul.f32 1.442695, %v1039_v53  ;;  %v1297_v53 = vld [vmem:[%s3734_s4 + $0x68] sm:$0xff] }
 0x1ea   : > { %1358 = vmatpush.msrb.mxu0 %v1306_v40 }
 0x1eb   : > { %2396 = vpow2.f32 %v1040_v54  ;;  %v1294_v54 = vld [vmem:[%s3734_s4 + $0x50] sm:$0xff] }
 0x1ec   : > { %1359 = vmatpush.msrb.mxu0 %v1304_v42  ;;  %v1350_v42 = vperm.slane %v1348_v41, 0 }
 0x1ee   : > { %v1096_v55 = vpop.f32.mrf.mxu2  ;;  %1360 = vmatpush.msrb.mxu0 %v1302_v44  ;;  %v1351_v44 = vperm.slane %v1348_v41, 1  ;;  %v1500_v41 = vld [vmem:[#allocation3 + $0x80] sm:$0xff] }
 0x1ef   : > { %v1099_v56 = vsel %vm3372_vm2, -1e-10, %v1096_v55  ;;  %v1295_v55 = vld [vmem:[%s3734_s4 + $0x58] sm:$0xff] }
 0x1f0   : > { %v1100_v57 = vsel %vm1035_vm3, %v1099_v56, -inf  ;;  %1361 = vmatpush.msrb.mxu0 %v1300_v47 }
 0x1f1   : > { %v2397_v27 = vpop.eup %2396  ;;  %1101 = vmax.xlane.f32.xlu2 %v1100_v57  ;;  %v1293_v57 = vld [vmem:[%s3734_s4 + $0x48] sm:$0xff] }
 0x1f2   : > { %v1042_v58 = vsel %vm1035_vm3, %v2397_v27, 0.0  ;;  %1362 = vmatpush.msrb.mxu0 %v1298_v49 }
 0x1f3   : > { %1043 = vadd.xlane.f32.xlu0 %v1042_v58 }
 0x1f4   : > { %1363 = vmatpush.msrb.mxu0 %v1296_v52 }
 0x1f6   : > { %v1231_v59 = vpop.f32.mrf.mxu2  ;;  %1364 = vmatpush.msrb.mxu0 %v1294_v54 }
 0x1f7   : > { %v1234_v60 = vsel %vm3372_vm2, -1e-10, %v1231_v59 }
 0x1f8   : > { %v1235_v61 = vsel %vm1035_vm3, %v1234_v60, -inf }
 0x1f9   : > { %1236 = vmax.xlane.f32.xlu2 %v1235_v61  ;;  %v1291_v61 = vld [vmem:[%s3734_s4 + $0x38] sm:$0xff] }
 0x201   : > { %1172 = vmax.xlane.f32.xlu2 %v1171_v0  ;;  %v1286_v0 = vld [vmem:[%s3734_s4 + $0x10] sm:$0xff] }
 0x219   : > { %1112 = vrot.lane.b32.xlu2 %v960_v48, %s2588_s21  ;;  %v1301_v48 = vld [vmem:[%s3734_s4 + $0x88] sm:$0xff] }
 0x21a   : > { %1401 = vmatpush.msrb.mxu2 %v1301_v48 }
 0x264   : > { %v1102_v1 = vpop.xlane.xlu2 %1101 }
 0x265   : > { %v1103_v2 = vsub.f32 %v1099_v56, %v1102_v1  ;;  %v1292_v56 = vld [vmem:[%s3734_s4 + $0x40] sm:$0xff]  ;;  %v1287_v1 = vld [vmem:[%s3734_s4 + $0x18] sm:$0xff] }
 0x266   : > { %v1044_v3 = vpop.xlane.xlu0 %1043  ;;  %1365 = vmatpush.msrb.mxu0 %v1292_v56 }
 0x267   : > { %v1104_v4 = vmul.f32 1.442695, %v1103_v2  ;;  %2398 = vrcp.f32 %v1044_v3  ;;  %v1284_v2 = vld [vmem:[%s3734_s4] sm:$0xff]  ;;  %v1285_v3 = vld [vmem:[%s3734_s4 + $0x8] sm:$0xff] }
 0x269   : > { %2400 = vpow2.f32 %v1104_v4  ;;  %v1346_v4 = vld [vmem:[%s3734_s4 + $0x1f0] sm:$0xff] }
 0x26c   : > { %v1237_v5 = vpop.xlane.xlu2 %1236 }
 0x26d   : > { %v2399_v6 = vpop.eup %2398  ;;  %v1238_v7 = vsub.f32 %v1234_v60, %v1237_v5  ;;  %v1290_v60 = vld [vmem:[%s3734_s4 + $0x30] sm:$0xff]  ;;  %v1347_v5 = vld [vmem:[%s3734_s4 + $0x1f8] sm:$0xff] }
 0x26e   : > { %v1046_v8 = vmul.f32 %v2399_v6, %v2397_v27  ;;  %1366 = vmatpush.msrb.mxu0 %v1290_v60  ;;  %v1344_v6 = vld [vmem:[%s3734_s4 + $0x1e0] sm:$0xff]  ;;  %v1609_v60 = vld [vmem:[#allocation3 + $0x3e8] sm:$0xff] }
 0x26f   : > { %v2401_v9 = vpop.eup %2400  ;;  %v1239_v10 = vmul.f32 1.442695, %v1238_v7  ;;  %v1345_v7 = vld [vmem:[%s3734_s4 + $0x1e8] sm:$0xff] }
 0x270   : > { %2301 = vmatmul.msk.f32.vlgmr.msrb.gmra.mxu1 %vm1035_vm3, %v1046_v8  ;;  %v1106_v11 = vsel %vm1035_vm3, %v2401_v9, 0.0  ;;  %1278 = vst.msk [vmem:[%s3399_s24] sm:$0xff] %vm1035_vm3, %v1046_v8  ;;  %1367 = vmatpush.msrb.mxu0 %v1288_v62  ;;  %v1342_v8 = vld [vmem:[%s3734_s4 + $0x1d0] sm:$0xff] }
 0x271   : > { %2402 = vpow2.f32 %v1239_v10  ;;  %1107 = vadd.xlane.f32.xlu1 %v1106_v11  ;;  %1374 = vmatpush.msrb.mxu1 %v1346_v4  ;;  %v1340_v10 = vld [vmem:[%s3734_s4 + $0x1c0] sm:$0xff]  ;;  %v1341_v11 = vld [vmem:[%s3734_s4 + $0x1c8] sm:$0xff]  ;;  %v1604_v62 = vld [vmem:[#allocation3 + $0x3c0] sm:$0xff] }
 0x272   : > { %1368 = vmatpush.msrb.mxu0 %v1286_v0  ;;  %v1536_v0 = vld [vmem:[#allocation3 + $0x1a0] sm:$0xff] }
 0x273   : > { %1375 = vmatpush.msrb.mxu1 %v1344_v6  ;;  %v1532_v4 = vld [vmem:[#allocation3 + $0x180] sm:$0xff] }
 0x274   : > { %v1173_v12 = vpop.xlane.xlu2 %1172  ;;  %1369 = vmatpush.msrb.mxu0 %v1284_v2  ;;  %v1537_v2 = vld [vmem:[#allocation3 + $0x1a8] sm:$0xff] }
 0x275   : > { %v1174_v13 = vsub.f32 %v1170_v63, %v1173_v12  ;;  %v1289_v63 = vld [vmem:[%s3734_s4 + $0x28] sm:$0xff]  ;;  %1376 = vmatpush.msrb.mxu1 %v1342_v8  ;;  %v1338_v12 = vld [vmem:[%s3734_s4 + $0x1b0] sm:$0xff]  ;;  %v1597_v8 = vld [vmem:[#allocation3 + $0x388] sm:$0xff] }
 0x277   : > { %v2403_v14 = vpop.eup %2402  ;;  %v1175_v15 = vmul.f32 1.442695, %v1174_v13  ;;  %v1339_v13 = vld [vmem:[%s3734_s4 + $0x1b8] sm:$0xff]  ;;  %1377 = vmatpush.msrb.mxu1 %v1340_v10  ;;  %v1592_v10 = vld [vmem:[#allocation3 + $0x360] sm:$0xff] }
 0x278   : > { %v1241_v16 = vsel %vm1035_vm3, %v2403_v14, 0.0 }
 0x279   : > { %2404 = vpow2.f32 %v1175_v15  ;;  %1242 = vadd.xlane.f32.xlu2 %v1241_v16  ;;  %v1337_v15 = vld [vmem:[%s3734_s4 + $0x1a8] sm:$0xff]  ;;  %1378 = vmatpush.msrb.mxu1 %v1338_v12  ;;  %v1334_v16 = vld [vmem:[%s3734_s4 + $0x190] sm:$0xff]  ;;  %v1593_v12 = vld [vmem:[#allocation3 + $0x368] sm:$0xff] }
 0x27c   : > { %v1113_v17 = vpop.permute.xlu2 %1112 }
 0x27d   : > { %1133 = vmatpush.msrb.mxu3 %v1113_v17  ;;  %v1335_v17 = vld [vmem:[%s3734_s4 + $0x198] sm:$0xff] }
 0x27f   : > { %v2405_v18 = vpop.eup %2404 }
 0x280   : > { %v1177_v19 = vsel %vm1035_vm3, %v2405_v18, 0.0 }
 0x281   : > { %1178 = vadd.xlane.f32.xlu1 %v1177_v19  ;;  %v1333_v19 = vld [vmem:[%s3734_s4 + $0x188] sm:$0xff] }
 0x291   : > { %1247 = vrot.lane.b32.xlu2 %v1000_v50, %s2588_s21  ;;  %v1299_v50 = vld [vmem:[%s3734_s4 + $0x78] sm:$0xff] }
 0x292   : > { %1402 = vmatpush.msrb.mxu2 %v1299_v50 }
 0x294   : > { %1403 = vmatpush.msrb.mxu2 %v1297_v53 }
 0x296   : > { %1404 = vmatpush.msrb.mxu2 %v1295_v55 }
 0x298   : > { %1405 = vmatpush.msrb.mxu2 %v1293_v57  ;;  %v2590_v57 = vmov 256.0  }
 0x29a   : > { %1406 = vmatpush.msrb.mxu2 %v1291_v61  ;;  %v1540_v61 = vld [vmem:[#allocation3 + $0x1c0] sm:$0xff] }
 0x29c   : > { %1407 = vmatpush.msrb.mxu2 %v1289_v63 }
 0x29e   : > { %1408 = vmatpush.msrb.mxu2 %v1287_v1  ;;  %v1600_v1 = vld [vmem:[#allocation3 + $0x3a0] sm:$0xff] }
 0x2a0   : > { %1409 = vmatpush.msrb.mxu2 %v1285_v3  ;;  %v1601_v3 = vld [vmem:[#allocation3 + $0x3a8] sm:$0xff] }
 0x2e4   : > { %v1108_v20 = vpop.xlane.xlu1 %1107 }
 0x2e5   : > { %2406 = vrcp.f32 %v1108_v20  ;;  %v1330_v20 = vld [vmem:[%s3734_s4 + $0x170] sm:$0xff] }
 0x2eb   : > { %v2407_v21 = vpop.eup %2406 }
 0x2ec   : > { %v1110_v22 = vmul.f32 %v2407_v21, %v2401_v9  ;;  %v1243_v23 = vpop.xlane.xlu2 %1242  ;;  %v1343_v9 = vld [vmem:[%s3734_s4 + $0x1d8] sm:$0xff] }
 0x2ed   : > { %2408 = vrcp.f32 %v1243_v23  ;;  %v1067_v24 = vpop.f32.mrf.mxu1  ;;  %v1331_v21 = vld [vmem:[%s3734_s4 + $0x178] sm:$0xff]  ;;  %v1329_v23 = vld [vmem:[%s3734_s4 + $0x168] sm:$0xff] }
 0x2ee   : > { %1070 = vst.msk [vmem:[#allocation2] sm:$0xff] %vm1004_vm0, %v1067_v24  ;;  %2304 = vmatmul.msk.f32.vlgmr.msrb.gmra.mxu3 %vm1035_vm3, %v1110_v22  ;;  %v1326_v24 = vld [vmem:[%s3734_s4 + $0x150] sm:$0xff] }
 0x2ef   : > { %1279 = vst.msk [vmem:[%s3399_s24 + $0x8] sm:$0xff] %vm1035_vm3, %v1110_v22  ;;  %v1328_v22 = vld [vmem:[%s3734_s4 + $0x160] sm:$0xff] }
 0x2f3   : > { %v2409_v25 = vpop.eup %2408 }
 0x2f4   : > { %v1245_v26 = vmul.f32 %v2409_v25, %v2403_v14  ;;  %v1179_v28 = vpop.xlane.xlu1 %1178  ;;  %v1248_v29 = vpop.permute.xlu2 %1247  ;;  %v1336_v14 = vld [vmem:[%s3734_s4 + $0x1a0] sm:$0xff]  ;;  %v1327_v25 = vld [vmem:[%s3734_s4 + $0x158] sm:$0xff] }
 0x2f5   : > { %2410 = vrcp.f32 %v1179_v28  ;;  %1268 = vmatpush.msra.mxu3 %v1248_v29  ;;  %1379 = vmatpush.msrb.mxu1 %v1336_v14  ;;  %v1325_v28 = vld [vmem:[%s3734_s4 + $0x148] sm:$0xff]  ;;  %v1588_v14 = vld [vmem:[#allocation3 + $0x340] sm:$0xff] }
 0x2f6   : > { %2310 = vmatmul.msk.f32.vlgmr.msra.gmra.mxu3 %vm1035_vm3, %v1245_v26  ;;  %1281 = vst.msk [vmem:[%s3399_s24 + $0x18] sm:$0xff] %vm1035_vm3, %v1245_v26  ;;  %v1324_v26 = vld [vmem:[%s3734_s4 + $0x140] sm:$0xff]  ;;  %2412 = vrcp.f32 %v2590_v57 }
 0x2f7   : > { %1414 = vmatpush.msrb.mxu3 %v1347_v5  ;;  %1380 = vmatpush.msrb.mxu1 %v1334_v16  ;;  %v1596_v5 = vld [vmem:[#allocation3 + $0x380] sm:$0xff]  ;;  %v1525_v16 = vld [vmem:[#allocation3 + $0x148] sm:$0xff] }
 0x2f9   : > { %1415 = vmatpush.msrb.mxu3 %v1345_v7  ;;  %v1533_v7 = vld [vmem:[#allocation3 + $0x188] sm:$0xff] }
 0x2fb   : > { %v2411_v30 = vpop.eup %2410  ;;  %1416 = vmatpush.msrb.mxu3 %v1343_v9  ;;  %v1528_v9 = vld [vmem:[#allocation3 + $0x160] sm:$0xff] }
 0x2fc   : > { %v1181_v31 = vmul.f32 %v2411_v30, %v2405_v18  ;;  %v1332_v18 = vld [vmem:[%s3734_s4 + $0x180] sm:$0xff]  ;;  %v1322_v30 = vld [vmem:[%s3734_s4 + $0x130] sm:$0xff]  ;;  %v3624_v63 = vpop.eup %2412 }
 0x2fd   : > { %1417 = vmatpush.msrb.mxu3 %v1341_v11  ;;  %1381 = vmatpush.msrb.mxu1 %v1332_v18  ;;  %v1442_v6 = vmul.f32 256.0, %v3624_v63  ;;  %v1529_v11 = vld [vmem:[#allocation3 + $0x168] sm:$0xff]  ;;  %v1520_v18 = vld [vmem:[#allocation3 + $0x120] sm:$0xff]  ;;  %vm1446_vm5 = vweird.f32 %v3624_v63 }
 0x2fe   : > { %2307 = vmatmul.msk.f32.vlgmr.msra.gmra.mxu1 %vm1035_vm3, %v1181_v31  ;;  %1280 = vst.msk [vmem:[%s3399_s24 + $0x10] sm:$0xff] %vm1035_vm3, %v1181_v31  ;;  %v1323_v31 = vld [vmem:[%s3734_s4 + $0x138] sm:$0xff] }
 0x2ff   : > { %1418 = vmatpush.msrb.mxu3 %v1339_v13  ;;  %1382 = vmatpush.msrb.mxu1 %v1330_v20  ;;  %v1524_v13 = vld [vmem:[#allocation3 + $0x140] sm:$0xff]  ;;  %v1521_v20 = vld [vmem:[#allocation3 + $0x128] sm:$0xff] }
 0x301   : > { %1419 = vmatpush.msrb.mxu3 %v1337_v15  ;;  %1383 = vmatpush.msrb.mxu1 %v1328_v22  ;;  %v1443_v15 = vsub.f32 1.0, %v1442_v6  ;;  %v1516_v22 = vld [vmem:[#allocation3 + $0x100] sm:$0xff]  ;;  %v1547_v6 = vld [vmem:[#allocation3 + $0x1f8] sm:$0xff] }
 0x303   : > { %1420 = vmatpush.msrb.mxu3 %v1335_v17  ;;  %1384 = vmatpush.msrb.mxu1 %v1326_v24  ;;  %v1589_v17 = vld [vmem:[#allocation3 + $0x348] sm:$0xff]  ;;  %v1444_v24 = vmul.f32 %v3624_v63, %v1443_v15  ;;  %v1603_v15 = vld [vmem:[#allocation3 + $0x3b8] sm:$0xff] }
 0x305   : > { %1421 = vmatpush.msrb.mxu3 %v1333_v19  ;;  %1385 = vmatpush.msrb.mxu1 %v1324_v26  ;;  %v1584_v19 = vld [vmem:[#allocation3 + $0x320] sm:$0xff]  ;;  %v1581_v26 = vld [vmem:[#allocation3 + $0x308] sm:$0xff] }
 0x307   : > { %1422 = vmatpush.msrb.mxu3 %v1331_v21  ;;  %1386 = vmatpush.msrb.mxu1 %v1322_v30  ;;  %v1585_v21 = vld [vmem:[#allocation3 + $0x328] sm:$0xff] }
 0x308   : > { %v1513_v30 = vld [vmem:[#allocation3 + $0xe8] sm:$0xff] }
 0x309   : > { %1423 = vmatpush.msrb.mxu3 %v1329_v23  ;;  %1387 = vmatpush.msrb.mxu1 %v1320_v32  ;;  %v1580_v23 = vld [vmem:[#allocation3 + $0x300] sm:$0xff] }
 0x30a   : > { %v1508_v32 = vld [vmem:[#allocation3 + $0xc0] sm:$0xff] }
 0x30b   : > { %1424 = vmatpush.msrb.mxu3 %v1327_v25  ;;  %1388 = vmatpush.msrb.mxu1 %v1318_v34  ;;  %v1517_v25 = vld [vmem:[#allocation3 + $0x108] sm:$0xff]  ;;  %v1445_v34 = vadd.f32 %v3624_v63, %v1444_v24  ;;  %v1526_v24 = vld [vmem:[#allocation3 + $0x150] sm:$0xff] }
 0x30d   : > { %1425 = vmatpush.msrb.mxu3 %v1325_v28  ;;  %1389 = vmatpush.msrb.mxu1 %v1316_v36  ;;  %v1512_v28 = vld [vmem:[#allocation3 + $0xe0] sm:$0xff]  ;;  %v1573_v36 = vld [vmem:[#allocation3 + $0x2c8] sm:$0xff] }
 0x30f   : > { %1426 = vmatpush.msrb.mxu3 %v1323_v31  ;;  %v1577_v31 = vld [vmem:[#allocation3 + $0x2e8] sm:$0xff] }
 0x311   : > { %1427 = vmatpush.msrb.mxu3 %v1321_v33  ;;  %v1572_v33 = vld [vmem:[#allocation3 + $0x2c0] sm:$0xff] }
 0x313   : > { %1428 = vmatpush.msrb.mxu3 %v1319_v35  ;;  %v1509_v35 = vld [vmem:[#allocation3 + $0xc8] sm:$0xff] }
 0x315   : > { %1429 = vmatpush.msrb.mxu3 %v1317_v37  ;;  %v1504_v37 = vld [vmem:[#allocation3 + $0xa0] sm:$0xff] }
 0x317   : > { %1682 = vmatpush.msra.mxu3 %v1609_v60  ;;  %v1492_v60 = vld [vmem:[#allocation3 + $0x40] sm:$0xff] }
 0x371   : > { %v1135_v27 = vpop.f32.mrf.mxu3 }
 0x372   : > { %1139 = vrot.lane.b32.xlu2 %v1135_v27, %s2588_s21  ;;  %v1544_v27 = vld [vmem:[#allocation3 + $0x1e0] sm:$0xff] }
 0x373   : > { %1622 = vmatpush.msra.mxu0 %v1544_v27 }
 0x375   : > { %1623 = vmatpush.msra.mxu0 %v1540_v61  ;;  %v1556_v61 = vld [vmem:[#allocation3 + $0x240] sm:$0xff] }
 0x377   : > { %1624 = vmatpush.msra.mxu0 %v1536_v0  ;;  %v1484_v0 = vld [vmem:[#allocation3] sm:$0xff] }
 0x379   : > { %v1270_v58 = vpop.f32.mrf.mxu3  ;;  %1625 = vmatpush.msra.mxu0 %v1532_v4  ;;  %v1546_v4 = vld [vmem:[#allocation3 + $0x1f0] sm:$0xff] }
 0x37a   : > { %1274 = vrot.lane.b32.xlu0 %v1270_v58, %s2588_s21  ;;  %v1608_v58 = vld [vmem:[#allocation3 + $0x3e0] sm:$0xff]  ;;  %s2131_s21 = scalar_lea.sflag [#allocation10], %s3394_s8 }
 0x37b   : > { %v1202_v59 = vpop.f32.mrf.mxu1  ;;  %1642 = vmatpush.msra.mxu1 %v1608_v58  ;;  %1626 = vmatpush.msra.mxu0 %v1528_v9  ;;  %v1606_v9 = vld [vmem:[#allocation3 + $0x3d0] sm:$0xff] }
 0x37c   : > { %1205 = vst.msk [vmem:[#allocation2 + $0x8] sm:$0xff] %vm1004_vm0, %v1202_v59  ;;  %v1545_v59 = vld [vmem:[#allocation3 + $0x1e8] sm:$0xff] }
 0x37d   : > { %1662 = vmatpush.msra.mxu2 %v1545_v59  ;;  %1643 = vmatpush.msra.mxu1 %v1604_v62  ;;  %v1493_v62 = vld [vmem:[#allocation3 + $0x48] sm:$0xff] }
 0x37e   : > { %1627 = vmatpush.msra.mxu0 %v1524_v13  ;;  %v1602_v13 = vld [vmem:[#allocation3 + $0x3b0] sm:$0xff] }
 0x37f   : > { %1644 = vmatpush.msra.mxu1 %v1600_v1  ;;  %v1548_v1 = vld [vmem:[#allocation3 + $0x200] sm:$0xff] }
 0x380   : > { %1628 = vmatpush.msra.mxu0 %v1520_v18  ;;  %v1535_v18 = vld [vmem:[#allocation3 + $0x198] sm:$0xff] }
 0x381   : > { %1645 = vmatpush.msra.mxu1 %v1596_v5  ;;  %v1610_v5 = vld [vmem:[#allocation3 + $0x3f0] sm:$0xff] }
 0x382   : > { %1629 = vmatpush.msra.mxu0 %v1516_v22  ;;  %v1531_v22 = vld [vmem:[#allocation3 + $0x178] sm:$0xff] }
 0x383   : > { %1646 = vmatpush.msra.mxu1 %v1592_v10  ;;  %v1543_v10 = vld [vmem:[#allocation3 + $0x1d8] sm:$0xff] }
 0x384   : > { %1630 = vmatpush.msra.mxu0 %v1512_v28  ;;  %v1591_v28 = vld [vmem:[#allocation3 + $0x358] sm:$0xff] }
 0x385   : > { %1647 = vmatpush.msra.mxu1 %v1588_v14  ;;  %v1539_v14 = vld [vmem:[#allocation3 + $0x1b8] sm:$0xff] }
 0x386   : > { %1631 = vmatpush.msra.mxu0 %v1508_v32  ;;  %v1587_v32 = vld [vmem:[#allocation3 + $0x338] sm:$0xff] }
 0x387   : > { %1648 = vmatpush.msra.mxu1 %v1584_v19  ;;  %v1599_v19 = vld [vmem:[#allocation3 + $0x398] sm:$0xff] }
 0x388   : > { %1632 = vmatpush.msra.mxu0 %v1504_v37  ;;  %v1514_v37 = vld [vmem:[#allocation3 + $0xf0] sm:$0xff] }
 0x389   : > { %1649 = vmatpush.msra.mxu1 %v1580_v23  ;;  %v1595_v23 = vld [vmem:[#allocation3 + $0x378] sm:$0xff] }
 0x38a   : > { %1633 = vmatpush.msra.mxu0 %v1500_v41  ;;  %v1510_v41 = vld [vmem:[#allocation3 + $0xd0] sm:$0xff] }
 0x3cc   : > { %v1140_v29 = vpop.permute.xlu2 %1139 }
 0x3cd   : > { %1143 = vst.msk [vmem:[#allocation2] sm:$0xff] %vm1142_vm4, %v1140_v29  ;;  %v1576_v29 = vld [vmem:[#allocation3 + $0x2e0] sm:$0xff] }
 0x3ce   : > { %1650 = vmatpush.msra.mxu1 %v1576_v29  ;;  %v1522_v29 = vld [vmem:[#allocation3 + $0x130] sm:$0xff] }
 0x3d0   : > { %1651 = vmatpush.msra.mxu1 %v1572_v33  ;;  %v1518_v33 = vld [vmem:[#allocation3 + $0x110] sm:$0xff] }
 0x3d4   : > { %v1282_v38 = vld [vmem:[#allocation2] sm:$0xff] }
 0x3d5   : > { %1370 = vmatmul.f32.vlgmr.msrb.gmra.mxu0 %v1282_v38  ;;  %1410 = vmatmul.f32.vlgmr.msrb.gmra.mxu2 %v1282_v38  ;;  %v1568_v38 = vld [vmem:[#allocation3 + $0x2a0] sm:$0xff] }
 0x3d6   : > { %1652 = vmatpush.msra.mxu1 %v1568_v38  ;;  %v1578_v38 = vld [vmem:[#allocation3 + $0x2f0] sm:$0xff] }
 0x3ec   : > { %v1275_v39 = vpop.permute.xlu0 %1274 }
 0x3ed   : > { %1277 = vst.msk [vmem:[#allocation2 + $0x8] sm:$0xff] %vm1142_vm4, %v1275_v39  ;;  %v1505_v39 = vld [vmem:[#allocation3 + $0xa8] sm:$0xff] }
 0x3f4   : > { %v1283_v40 = vld [vmem:[#allocation2 + $0x8] sm:$0xff] }
 0x3f5   : > { %1390 = vmatmul.f32.vlgmr.msrb.gmra.mxu1 %v1283_v40  ;;  %1430 = vmatmul.f32.vlgmr.msrb.gmra.mxu3 %v1283_v40  ;;  %v1569_v40 = vld [vmem:[#allocation3 + $0x2a8] sm:$0xff] }
 0x452   : > { %v1371_v43 = vpop.f32.mrf.mxu0 }
 0x453   : > { %v1372_v48 = vadd.f32 %v1371_v43, %v1350_v42  ;;  %v1564_v42 = vld [vmem:[#allocation3 + $0x280] sm:$0xff]  ;;  %v3631_v43 = vsel %vm1446_vm5, %v3624_v63, %v1445_v34  ;;  %v1582_v34 = vld [vmem:[#allocation3 + $0x310] sm:$0xff] }
 0x454   : > { %1653 = vmatpush.msra.mxu1 %v1564_v42  ;;  %v1552_v63 = vld [vmem:[#allocation3 + $0x220] sm:$0xff]  ;;  %v1574_v42 = vld [vmem:[#allocation3 + $0x2d0] sm:$0xff] }
 0x458   : > { %v1411_v45 = vpop.f32.mrf.mxu2 }
 0x459   : > { %v1412_v49 = vadd.f32 %v1411_v45, %v1351_v44  ;;  %v1501_v44 = vld [vmem:[#allocation3 + $0x88] sm:$0xff] }
 0x45a   : > { %v1565_v45 = vld [vmem:[#allocation3 + $0x288] sm:$0xff] }
 0x472   : > { %v1391_v47 = vpop.f32.mrf.mxu1 }
 0x473   : > { %v1392_v50 = vadd.f32 %v1391_v47, %v1372_v48  ;;  %v1496_v47 = vld [vmem:[#allocation3 + $0x60] sm:$0xff] }
 0x474   : > { %v1560_v48 = vld [vmem:[#allocation3 + $0x260] sm:$0xff]  ;;  %1634 = vmatpush.msra.mxu0 %v1496_v47  ;;  %v1506_v47 = vld [vmem:[#allocation3 + $0xb0] sm:$0xff] }
 0x475   : > { %v3617_v54 = vadd.f32 %v1392_v50, %v3086_v46  ;;  %v1541_v46 = vld [vmem:[#allocation3 + $0x1c8] sm:$0xff]  ;;  %1654 = vmatpush.msra.mxu1 %v1560_v48  ;;  %v1570_v48 = vld [vmem:[#allocation3 + $0x2b0] sm:$0xff] }
 0x476   : > { %1663 = vmatpush.msra.mxu2 %v1541_v46  ;;  %v1497_v50 = vld [vmem:[#allocation3 + $0x68] sm:$0xff]  ;;  %1635 = vmatpush.msra.mxu0 %v1492_v60  ;;  %v1562_v60 = vld [vmem:[#allocation3 + $0x270] sm:$0xff] }
 0x477   : > { %1655 = vmatpush.msra.mxu1 %v1556_v61  ;;  %v1489_v46 = vld [vmem:[#allocation3 + $0x28] sm:$0xff]  ;;  %v1499_v61 = vld [vmem:[#allocation3 + $0x78] sm:$0xff] }
 0x478   : > { %v1431_v52 = vpop.f32.mrf.mxu3  ;;  %1664 = vmatpush.msra.mxu2 %v1537_v2  ;;  %v1485_v2 = vld [vmem:[#allocation3 + $0x8] sm:$0xff] }
 0x479   : > { %v1432_v53 = vadd.f32 %v1431_v52, %v1412_v49  ;;  %v1561_v52 = vld [vmem:[#allocation3 + $0x268] sm:$0xff]  ;;  %1656 = vmatpush.msra.mxu1 %v1552_v63 }
 0x47a   : > { %1665 = vmatpush.msra.mxu2 %v1533_v7  ;;  %v1611_v7 = vld [vmem:[#allocation3 + $0x3f8] sm:$0xff] }
 0x47b   : > { %v3620_v55 = vadd.f32 %v1432_v53, %v3102_v51  ;;  %v1605_v51 = vld [vmem:[#allocation3 + $0x3c8] sm:$0xff]  ;;  %1657 = vmatpush.msra.mxu1 %v1548_v1 }
 0x47c   : > { %1683 = vmatpush.msra.mxu3 %v1605_v51  ;;  %1666 = vmatpush.msra.mxu2 %v1529_v11  ;;  %v1553_v51 = vld [vmem:[#allocation3 + $0x228] sm:$0xff]  ;;  %v1607_v11 = vld [vmem:[#allocation3 + $0x3d8] sm:$0xff] }
 0x47d   : > { %v1438_v56 = vadd.f32 %v3620_v55, %v3617_v54  ;;  %1722 = vmatpush.msrb.mxu1 %v1610_v5  ;;  %v1486_v5 = vld [vmem:[#allocation3 + $0x10] sm:$0xff] }
 0x47e   : > { %1684 = vmatpush.msra.mxu3 %v1601_v3  ;;  %1667 = vmatpush.msra.mxu2 %v1525_v16  ;;  %v1549_v3 = vld [vmem:[#allocation3 + $0x208] sm:$0xff]  ;;  %v1534_v16 = vld [vmem:[#allocation3 + $0x190] sm:$0xff] }
 0x47f   : > { %1439 = vadd.xlane.f32.xlu1 %v1438_v56  ;;  %1723 = vmatpush.msrb.mxu1 %v1606_v9  ;;  %v1551_v9 = vld [vmem:[#allocation3 + $0x218] sm:$0xff] }
 0x480   : > { %1685 = vmatpush.msra.mxu3 %v1597_v8  ;;  %1668 = vmatpush.msra.mxu2 %v1521_v20  ;;  %v1542_v8 = vld [vmem:[#allocation3 + $0x1d0] sm:$0xff] }
 0x481   : > { %1724 = vmatpush.msrb.mxu1 %v1602_v13  ;;  %v1530_v20 = vld [vmem:[#allocation3 + $0x170] sm:$0xff] }
 0x482   : > { %1686 = vmatpush.msra.mxu3 %v1593_v12  ;;  %1669 = vmatpush.msra.mxu2 %v1517_v25  ;;  %v1538_v12 = vld [vmem:[#allocation3 + $0x1b0] sm:$0xff] }
 0x483   : > { %v1590_v25 = vld [vmem:[#allocation3 + $0x350] sm:$0xff] }
 0x484   : > { %1687 = vmatpush.msra.mxu3 %v1589_v17  ;;  %1670 = vmatpush.msra.mxu2 %v1513_v30  ;;  %v1598_v17 = vld [vmem:[#allocation3 + $0x390] sm:$0xff] }
 0x485   : > { %1725 = vmatpush.msrb.mxu1 %v1598_v17  ;;  %v1586_v30 = vld [vmem:[#allocation3 + $0x330] sm:$0xff] }
 0x486   : > { %1688 = vmatpush.msra.mxu3 %v1585_v21  ;;  %1671 = vmatpush.msra.mxu2 %v1509_v35  ;;  %v1594_v21 = vld [vmem:[#allocation3 + $0x370] sm:$0xff]  ;;  %v1519_v35 = vld [vmem:[#allocation3 + $0x118] sm:$0xff] }
 0x487   : > { %1726 = vmatpush.msrb.mxu1 %v1594_v21  ;;  %v1437_v17 = vld [vmem:[%s3737_s7] sm:$0x3] }
 0x488   : > { %1689 = vmatpush.msra.mxu3 %v1581_v26  ;;  %1672 = vmatpush.msra.mxu2 %v1505_v39  ;;  %v1527_v26 = vld [vmem:[#allocation3 + $0x158] sm:$0xff] }
 0x489   : > { %1727 = vmatpush.msrb.mxu1 %v1590_v25  ;;  %v1515_v39 = vld [vmem:[#allocation3 + $0xf8] sm:$0xff] }
 0x48a   : > { %1690 = vmatpush.msra.mxu3 %v1577_v31  ;;  %1673 = vmatpush.msra.mxu2 %v1501_v44  ;;  %v1523_v31 = vld [vmem:[#allocation3 + $0x138] sm:$0xff] }
 0x48b   : > { %1728 = vmatpush.msrb.mxu1 %v1586_v30  ;;  %v1511_v44 = vld [vmem:[#allocation3 + $0xd8] sm:$0xff]  ;;  %v1816_v30 = vld [vmem:[#allocation6 + $0xf0] sm:$0xff] }
 0x48c   : > { %1691 = vmatpush.msra.mxu3 %v1573_v36  ;;  %1674 = vmatpush.msra.mxu2 %v1497_v50  ;;  %v1583_v36 = vld [vmem:[#allocation3 + $0x318] sm:$0xff] }
 0x48d   : > { %1729 = vmatpush.msrb.mxu1 %v1582_v34  ;;  %v1571_v50 = vld [vmem:[#allocation3 + $0x2b8] sm:$0xff]  ;;  %v1878_v34 = vld [vmem:[#allocation6 + $0x2e0] sm:$0xff] }
 0x48e   : > { %1692 = vmatpush.msra.mxu3 %v1569_v40  ;;  %1675 = vmatpush.msra.mxu2 %v1493_v62  ;;  %v1579_v40 = vld [vmem:[#allocation3 + $0x2f8] sm:$0xff] }
 0x48f   : > { %1730 = vmatpush.msrb.mxu1 %v1578_v38  ;;  %v1563_v62 = vld [vmem:[#allocation3 + $0x278] sm:$0xff]  ;;  %v1876_v38 = vld [vmem:[#allocation6 + $0x2d0] sm:$0xff] }
 0x490   : > { %1693 = vmatpush.msra.mxu3 %v1565_v45  ;;  %1676 = vmatpush.msra.mxu2 %v1489_v46  ;;  %v1575_v45 = vld [vmem:[#allocation3 + $0x2d8] sm:$0xff] }
 0x491   : > { %1731 = vmatpush.msrb.mxu1 %v1574_v42  ;;  %v1495_v46 = vld [vmem:[#allocation3 + $0x58] sm:$0xff]  ;;  %v1874_v42 = vld [vmem:[#allocation6 + $0x2c0] sm:$0xff] }
 0x492   : > { %1694 = vmatpush.msra.mxu3 %v1561_v52  ;;  %1677 = vmatpush.msra.mxu2 %v1485_v2  ;;  %v1502_v52 = vld [vmem:[#allocation3 + $0x90] sm:$0xff] }
 0x493   : > { %1732 = vmatpush.msrb.mxu1 %v1570_v48  ;;  %v1554_v2 = vld [vmem:[#allocation3 + $0x230] sm:$0xff] }
 0x494   : > { %1742 = vmatpush.msrb.mxu2 %v1547_v6  ;;  %v1550_v6 = vld [vmem:[#allocation3 + $0x210] sm:$0xff] }
 0x495   : > { %v1872_v48 = vld [vmem:[#allocation6 + $0x2b0] sm:$0xff] }
 0x496   : > { %1743 = vmatpush.msrb.mxu2 %v1543_v10 }
 0x498   : > { %1744 = vmatpush.msrb.mxu2 %v1539_v14  ;;  %v1436_v14 = vld [vmem:[%s3736_s6] sm:$0x3] }
 0x49a   : > { %1745 = vmatpush.msrb.mxu2 %v1535_v18  ;;  %v1471_v18 = vperm.slane %v1436_v14, 0 }
 0x49c   : > { %1746 = vmatpush.msrb.mxu2 %v1531_v22 }
 0x49e   : > { %1747 = vmatpush.msrb.mxu2 %v1527_v26 }
 0x4a0   : > { %1748 = vmatpush.msrb.mxu2 %v1523_v31  ;;  %v1848_v31 = vld [vmem:[#allocation6 + $0x1f0] sm:$0xff] }
 0x4a2   : > { %1749 = vmatpush.msrb.mxu2 %v1519_v35  ;;  %v1910_v35 = vld [vmem:[#allocation6 + $0x3e0] sm:$0xff] }
 0x4a4   : > { %1750 = vmatpush.msrb.mxu2 %v1515_v39  ;;  %v1908_v39 = vld [vmem:[#allocation6 + $0x3d0] sm:$0xff] }
 0x4a6   : > { %1751 = vmatpush.msrb.mxu2 %v1511_v44  ;;  %v1906_v44 = vld [vmem:[#allocation6 + $0x3c0] sm:$0xff] }
 0x4f2   : > { %v1440_v49 = vpop.xlane.xlu1 %1439 }
 0x4f3   : > { %v1448_v53 = vmul.f32 %v3631_v43, %v1440_v49  ;;  %v1507_v49 = vld [vmem:[#allocation3 + $0xb8] sm:$0xff] }
 0x4f4   : > { %1752 = vmatpush.msrb.mxu2 %v1507_v49  ;;  %v1904_v49 = vld [vmem:[#allocation6 + $0x3b0] sm:$0xff] }
 0x4f5   : > { %v3635_v56 = vsub.f32 %v3617_v54, %v1448_v53  ;;  %v3638_v57 = vsub.f32 %v3620_v55, %v1448_v53  ;;  %v1557_v54 = vld [vmem:[#allocation3 + $0x248] sm:$0xff]  ;;  %v1488_v55 = vld [vmem:[#allocation3 + $0x20] sm:$0xff]  ;;  %v1566_v53 = vld [vmem:[#allocation3 + $0x290] sm:$0xff] }
 0x4f6   : > { %1695 = vmatpush.msra.mxu3 %v1557_v54  ;;  %1636 = vmatpush.msra.mxu0 %v1488_v55  ;;  %v1494_v54 = vld [vmem:[#allocation3 + $0x50] sm:$0xff] }
 0x4f7   : > { %v1451_v27 = vmul.f32 %v3635_v56, %v3635_v56  ;;  %v1452_v58 = vmul.f32 %v3638_v57, %v3638_v57  ;;  %1733 = vmatpush.msrb.mxu1 %v1566_v53  ;;  %v1558_v55 = vld [vmem:[#allocation3 + $0x250] sm:$0xff]  ;;  %v1870_v53 = vld [vmem:[#allocation6 + $0x2a0] sm:$0xff] }
 0x4f8   : > { %1696 = vmatpush.msra.mxu3 %v1553_v51  ;;  %1637 = vmatpush.msra.mxu0 %v1484_v0  ;;  %v1559_v51 = vld [vmem:[#allocation3 + $0x258] sm:$0xff]  ;;  %v1490_v0 = vld [vmem:[#allocation3 + $0x30] sm:$0xff] }
 0x4f9   : > { %v1453_v59 = vadd.f32 %v1452_v58, %v1451_v27  ;;  %v1503_v27 = vld [vmem:[#allocation3 + $0x98] sm:$0xff]  ;;  %1734 = vmatpush.msrb.mxu1 %v1562_v60  ;;  %v1868_v60 = vld [vmem:[#allocation6 + $0x290] sm:$0xff] }
 0x4fa   : > { %1697 = vmatpush.msra.mxu3 %v1549_v3  ;;  %1702 = vmatpush.msrb.mxu0 %v1546_v4  ;;  %v1567_v58 = vld [vmem:[#allocation3 + $0x298] sm:$0xff] }
 0x4fb   : > { %1454 = vadd.xlane.f32.xlu2 %v1453_v59  ;;  %1753 = vmatpush.msrb.mxu2 %v1503_v27  ;;  %v1498_v59 = vld [vmem:[#allocation3 + $0x70] sm:$0xff]  ;;  %v1491_v3 = vld [vmem:[#allocation3 + $0x38] sm:$0xff]  ;;  %v1902_v27 = vld [vmem:[#allocation6 + $0x3a0] sm:$0xff] }
 0x4fc   : > { %1762 = vmatpush.msrb.mxu3 %v1611_v7  ;;  %1703 = vmatpush.msrb.mxu0 %v1542_v8  ;;  %v1555_v4 = vld [vmem:[#allocation3 + $0x238] sm:$0xff] }
 0x4fd   : > { %1754 = vmatpush.msrb.mxu2 %v1499_v61  ;;  %1735 = vmatpush.msrb.mxu1 %v1558_v55  ;;  %v1487_v8 = vld [vmem:[#allocation3 + $0x18] sm:$0xff]  ;;  %v1900_v61 = vld [vmem:[#allocation6 + $0x390] sm:$0xff]  ;;  %v1866_v55 = vld [vmem:[#allocation6 + $0x280] sm:$0xff] }
 0x4fe   : > { %1763 = vmatpush.msrb.mxu3 %v1607_v11  ;;  %1704 = vmatpush.msrb.mxu0 %v1538_v12 }
 0x4ff   : > { %1755 = vmatpush.msrb.mxu2 %v1495_v46  ;;  %1736 = vmatpush.msrb.mxu1 %v1554_v2  ;;  %v1800_v46 = vld [vmem:[#allocation6 + $0x70] sm:$0xff]  ;;  %v1798_v2 = vld [vmem:[#allocation6 + $0x60] sm:$0xff] }
 0x500   : > { %1764 = vmatpush.msrb.mxu3 %v1603_v15  ;;  %1705 = vmatpush.msrb.mxu0 %v1534_v16 }
 0x501   : > { %1756 = vmatpush.msrb.mxu2 %v1491_v3  ;;  %1737 = vmatpush.msrb.mxu1 %v1550_v6  ;;  %v1830_v3 = vld [vmem:[#allocation6 + $0x160] sm:$0xff]  ;;  %v1796_v6 = vld [vmem:[#allocation6 + $0x50] sm:$0xff] }
 0x502   : > { %1765 = vmatpush.msrb.mxu3 %v1599_v19  ;;  %1706 = vmatpush.msrb.mxu0 %v1530_v20  ;;  %v1472_v19 = vperm.slane %v1436_v14, 1  ;;  %v1792_v14 = vld [vmem:[#allocation6 + $0x30] sm:$0xff] }
 0x503   : > { %1757 = vmatpush.msrb.mxu2 %v1487_v8  ;;  %v1860_v8 = vld [vmem:[#allocation6 + $0x250] sm:$0xff] }
 0x504   : > { %1766 = vmatpush.msrb.mxu3 %v1595_v23  ;;  %1707 = vmatpush.msrb.mxu0 %v1526_v24  ;;  %v1478_v23 = vperm.slane %v1437_v17, 0  ;;  %v1479_v24 = vperm.slane %v1437_v17, 1  ;;  %v1888_v17 = vld [vmem:[#allocation6 + $0x330] sm:$0xff] }
 0x506   : > { %1767 = vmatpush.msrb.mxu3 %v1591_v28  ;;  %1708 = vmatpush.msrb.mxu0 %v1522_v29 }
 0x508   : > { %1768 = vmatpush.msrb.mxu3 %v1587_v32  ;;  %1709 = vmatpush.msrb.mxu0 %v1518_v33  ;;  %v1880_v32 = vld [vmem:[#allocation6 + $0x2f0] sm:$0xff] }
 0x509   : > { %v1912_v33 = vld [vmem:[#allocation6 + $0x3f0] sm:$0xff] }
 0x50a   : > { %1769 = vmatpush.msrb.mxu3 %v1583_v36  ;;  %1710 = vmatpush.msrb.mxu0 %v1514_v37  ;;  %v1812_v36 = vld [vmem:[#allocation6 + $0xd0] sm:$0xff] }
 0x50b   : > { %v1844_v37 = vld [vmem:[#allocation6 + $0x1d0] sm:$0xff] }
 0x50c   : > { %1770 = vmatpush.msrb.mxu3 %v1579_v40  ;;  %1711 = vmatpush.msrb.mxu0 %v1510_v41  ;;  %v1810_v40 = vld [vmem:[#allocation6 + $0xc0] sm:$0xff] }
 0x50d   : > { %v1842_v41 = vld [vmem:[#allocation6 + $0x1c0] sm:$0xff] }
 0x50e   : > { %1771 = vmatpush.msrb.mxu3 %v1575_v45  ;;  %1712 = vmatpush.msrb.mxu0 %v1506_v47  ;;  %v1808_v45 = vld [vmem:[#allocation6 + $0xb0] sm:$0xff] }
 0x50f   : > { %v1840_v47 = vld [vmem:[#allocation6 + $0x1b0] sm:$0xff] }
 0x510   : > { %1772 = vmatpush.msrb.mxu3 %v1571_v50  ;;  %1713 = vmatpush.msrb.mxu0 %v1502_v52  ;;  %v1806_v50 = vld [vmem:[#allocation6 + $0xa0] sm:$0xff] }
 0x511   : > { %v1838_v52 = vld [vmem:[#allocation6 + $0x1a0] sm:$0xff] }
 0x512   : > { %1773 = vmatpush.msrb.mxu3 %v1567_v58  ;;  %1714 = vmatpush.msrb.mxu0 %v1498_v59  ;;  %v1804_v58 = vld [vmem:[#allocation6 + $0x90] sm:$0xff] }
 0x513   : > { %v1836_v59 = vld [vmem:[#allocation6 + $0x190] sm:$0xff] }
 0x514   : > { %1774 = vmatpush.msrb.mxu3 %v1563_v62  ;;  %1715 = vmatpush.msrb.mxu0 %v1494_v54  ;;  %v1802_v62 = vld [vmem:[#allocation6 + $0x80] sm:$0xff] }
 0x515   : > { %v1834_v54 = vld [vmem:[#allocation6 + $0x180] sm:$0xff] }
 0x516   : > { %1775 = vmatpush.msrb.mxu3 %v1559_v51  ;;  %1716 = vmatpush.msrb.mxu0 %v1490_v0  ;;  %v1832_v51 = vld [vmem:[#allocation6 + $0x170] sm:$0xff] }
 0x517   : > { %v1864_v0 = vld [vmem:[#allocation6 + $0x270] sm:$0xff] }
 0x518   : > { %1776 = vmatpush.msrb.mxu3 %v1555_v4  ;;  %1717 = vmatpush.msrb.mxu0 %v1486_v5  ;;  %v1862_v4 = vld [vmem:[#allocation6 + $0x260] sm:$0xff] }
 0x519   : > { %v1894_v5 = vld [vmem:[#allocation6 + $0x360] sm:$0xff] }
 0x51a   : > { %1777 = vmatpush.msrb.mxu3 %v1551_v9  ;;  %v1892_v9 = vld [vmem:[#allocation6 + $0x350] sm:$0xff] }
 0x56e   : > { %v1455_v63 = vpop.xlane.xlu2 %1454 }
 0x56f   : > { %v1456_v1 = vmul.f32 %v1455_v63, %v3631_v43  ;;  %v1898_v63 = vld [vmem:[#allocation6 + $0x380] sm:$0xff] }
 0x571   : > { %v1457_v7 = vadd.f32 1e-05, %v1456_v1  ;;  %v1896_v1 = vld [vmem:[#allocation6 + $0x370] sm:$0xff] }
 0x573   : > { %2414 = vrsqrt.f32 %v1457_v7  ;;  %vm1464_vm7 = vweird.f32 %v1457_v7 }
 0x579   : > { %v2415_v10 = vpop.eup %2414 }
 0x57a   : > { %v1459_v11 = vmul.f32 %v2415_v10, %v1457_v7  ;;  %vm1465_vm6 = vweird.f32 %v2415_v10  ;;  %v1828_v7 = vld [vmem:[#allocation6 + $0x150] sm:$0xff] }
 0x57b   : > { %vm1466_vm8 = vmor %vm1464_vm7, %vm1465_vm6 }
 0x57c   : > { %v1460_v12 = vmul.f32 %v2415_v10, %v1459_v11  ;;  %v1826_v11 = vld [vmem:[#allocation6 + $0x140] sm:$0xff] }
 0x57e   : > { %v1461_v13 = vmul.f32 0.5, %v1460_v12  ;;  %v1858_v12 = vld [vmem:[#allocation6 + $0x240] sm:$0xff] }
 0x580   : > { %v1462_v15 = vsub.f32 1.5, %v1461_v13  ;;  %v1890_v13 = vld [vmem:[#allocation6 + $0x340] sm:$0xff] }
 0x582   : > { %v1463_v16 = vmul.f32 %v2415_v10, %v1462_v15  ;;  %v1824_v15 = vld [vmem:[#allocation6 + $0x130] sm:$0xff] }
 0x584   : > { %v1467_v20 = vsel %vm1466_vm8, %v2415_v10, %v1463_v16  ;;  %v1794_v10 = vld [vmem:[#allocation6 + $0x40] sm:$0xff]  ;;  %v1856_v16 = vld [vmem:[#allocation6 + $0x230] sm:$0xff] }
 0x585   : > { %v1468_v21 = vmul.f32 %v1467_v20, %v3635_v56  ;;  %v1469_v22 = vmul.f32 %v1467_v20, %v3638_v57  ;;  %v1814_v56 = vld [vmem:[#allocation6 + $0xe0] sm:$0xff] }
 0x586   : > { %v1846_v57 = vld [vmem:[#allocation6 + $0x1e0] sm:$0xff] }
 0x587   : > { %v1475_v25 = vmul.f32 %v1471_v18, %v1468_v21  ;;  %v1476_v26 = vmul.f32 %v1472_v19, %v1469_v22  ;;  %v1790_v18 = vld [vmem:[#allocation6 + $0x20] sm:$0xff]  ;;  %v1788_v22 = vld [vmem:[#allocation6 + $0x10] sm:$0xff] }
 0x588   : > { %v1822_v19 = vld [vmem:[#allocation6 + $0x120] sm:$0xff] }
 0x589   : > { %v3653_v28 = vadd.f32 %v1478_v23, %v1475_v25  ;;  %v3655_v29 = vadd.f32 %v1479_v24, %v1476_v26  ;;  %v1854_v20 = vld [vmem:[#allocation6 + $0x220] sm:$0xff]  ;;  %v1820_v23 = vld [vmem:[#allocation6 + $0x110] sm:$0xff] }
 0x58a   : > { %v1886_v21 = vld [vmem:[#allocation6 + $0x320] sm:$0xff]  ;;  %v1852_v24 = vld [vmem:[#allocation6 + $0x210] sm:$0xff] }
 0x58b   : > { %1638 = vmatmul.f32.vlgmr.msra.gmra.mxu0 %v3653_v28  ;;  %1658 = vmatmul.f32.vlgmr.msra.gmra.mxu1 %v3655_v29  ;;  %v1884_v25 = vld [vmem:[#allocation6 + $0x310] sm:$0xff]  ;;  %v1786_v26 = vld [vmem:[#allocation6] sm:$0xff] }
 0x58c   : > { %1678 = vmatmul.f32.vlgmr.msra.gmra.mxu2 %v3653_v28  ;;  %1698 = vmatmul.f32.vlgmr.msra.gmra.mxu3 %v3655_v29 }
 0x58d   : > { %1920 = vmatpush.msra.mxu0 %v1816_v30  ;;  %1940 = vmatpush.msra.mxu1 %v1848_v31  ;;  %v1818_v30 = vld [vmem:[#allocation6 + $0x100] sm:$0xff]  ;;  %v1817_v31 = vld [vmem:[#allocation6 + $0xf8] sm:$0xff] }
 0x58e   : > { %1960 = vmatpush.msra.mxu2 %v1880_v32  ;;  %1980 = vmatpush.msra.mxu3 %v1912_v33  ;;  %v1849_v32 = vld [vmem:[#allocation6 + $0x1f8] sm:$0xff]  ;;  %v1850_v33 = vld [vmem:[#allocation6 + $0x200] sm:$0xff] }
 0x58f   : > { %1921 = vmatpush.msra.mxu0 %v1814_v56  ;;  %1941 = vmatpush.msra.mxu1 %v1846_v57  ;;  %v1882_v56 = vld [vmem:[#allocation6 + $0x300] sm:$0xff]  ;;  %v1815_v57 = vld [vmem:[#allocation6 + $0xe8] sm:$0xff] }
 0x590   : > { %1961 = vmatpush.msra.mxu2 %v1878_v34  ;;  %1981 = vmatpush.msra.mxu3 %v1910_v35  ;;  %v1847_v34 = vld [vmem:[#allocation6 + $0x1e8] sm:$0xff]  ;;  %v1881_v35 = vld [vmem:[#allocation6 + $0x2f8] sm:$0xff] }
 0x591   : > { %1922 = vmatpush.msra.mxu0 %v1812_v36  ;;  %1942 = vmatpush.msra.mxu1 %v1844_v37  ;;  %v1913_v36 = vld [vmem:[#allocation6 + $0x3f8] sm:$0xff] }
 0x592   : > { %1962 = vmatpush.msra.mxu2 %v1876_v38  ;;  %1982 = vmatpush.msra.mxu3 %v1908_v39  ;;  %v1813_v37 = vld [vmem:[#allocation6 + $0xd8] sm:$0xff]  ;;  %v1879_v39 = vld [vmem:[#allocation6 + $0x2e8] sm:$0xff] }
 0x593   : > { %1718 = vmatmul.f32.vlgmr.msrb.gmra.mxu0 %v3653_v28  ;;  %1738 = vmatmul.f32.vlgmr.msrb.gmra.mxu1 %v3655_v29  ;;  %v1845_v38 = vld [vmem:[#allocation6 + $0x1d8] sm:$0xff] }
 0x594   : > { %1758 = vmatmul.f32.vlgmr.msrb.gmra.mxu2 %v3653_v28  ;;  %1778 = vmatmul.f32.vlgmr.msrb.gmra.mxu3 %v3655_v29 }
 0x595   : > { %1923 = vmatpush.msra.mxu0 %v1810_v40  ;;  %1943 = vmatpush.msra.mxu1 %v1842_v41  ;;  %v1811_v40 = vld [vmem:[#allocation6 + $0xc8] sm:$0xff] }
 0x596   : > { %1963 = vmatpush.msra.mxu2 %v1874_v42  ;;  %1983 = vmatpush.msra.mxu3 %v1906_v44  ;;  %v1843_v41 = vld [vmem:[#allocation6 + $0x1c8] sm:$0xff]  ;;  %v1877_v42 = vld [vmem:[#allocation6 + $0x2d8] sm:$0xff] }
 0x597   : > { %1924 = vmatpush.msra.mxu0 %v1808_v45  ;;  %1944 = vmatpush.msra.mxu1 %v1840_v47  ;;  %v1809_v44 = vld [vmem:[#allocation6 + $0xb8] sm:$0xff]  ;;  %v1875_v47 = vld [vmem:[#allocation6 + $0x2c8] sm:$0xff] }
 0x598   : > { %1964 = vmatpush.msra.mxu2 %v1872_v48  ;;  %1984 = vmatpush.msra.mxu3 %v1904_v49  ;;  %v1841_v45 = vld [vmem:[#allocation6 + $0x1b8] sm:$0xff]  ;;  %v1807_v48 = vld [vmem:[#allocation6 + $0xa8] sm:$0xff] }
 0x599   : > { %1925 = vmatpush.msra.mxu0 %v1806_v50  ;;  %1945 = vmatpush.msra.mxu1 %v1838_v52  ;;  %v1805_v49 = vld [vmem:[#allocation6 + $0x98] sm:$0xff]  ;;  %v1803_v50 = vld [vmem:[#allocation6 + $0x88] sm:$0xff] }
 0x59a   : > { %1965 = vmatpush.msra.mxu2 %v1870_v53  ;;  %1985 = vmatpush.msra.mxu3 %v1902_v27  ;;  %v1801_v52 = vld [vmem:[#allocation6 + $0x78] sm:$0xff]  ;;  %v1839_v53 = vld [vmem:[#allocation6 + $0x1a8] sm:$0xff] }
 0x59b   : > { %1926 = vmatpush.msra.mxu0 %v1804_v58  ;;  %1946 = vmatpush.msra.mxu1 %v1836_v59  ;;  %v1873_v27 = vld [vmem:[#allocation6 + $0x2b8] sm:$0xff]  ;;  %v1911_v58 = vld [vmem:[#allocation6 + $0x3e8] sm:$0xff] }
 0x59c   : > { %1966 = vmatpush.msra.mxu2 %v1868_v60  ;;  %1986 = vmatpush.msra.mxu3 %v1900_v61  ;;  %v1799_v59 = vld [vmem:[#allocation6 + $0x68] sm:$0xff]  ;;  %v1837_v60 = vld [vmem:[#allocation6 + $0x198] sm:$0xff] }
 0x59d   : > { %1927 = vmatpush.msra.mxu0 %v1802_v62  ;;  %1947 = vmatpush.msra.mxu1 %v1834_v54  ;;  %v1871_v61 = vld [vmem:[#allocation6 + $0x2a8] sm:$0xff]  ;;  %v1909_v62 = vld [vmem:[#allocation6 + $0x3d8] sm:$0xff] }
 0x59e   : > { %1967 = vmatpush.msra.mxu2 %v1866_v55  ;;  %1987 = vmatpush.msra.mxu3 %v1898_v63  ;;  %v1797_v54 = vld [vmem:[#allocation6 + $0x58] sm:$0xff]  ;;  %v1835_v55 = vld [vmem:[#allocation6 + $0x188] sm:$0xff] }
 0x59f   : > { %1928 = vmatpush.msra.mxu0 %v1800_v46  ;;  %1948 = vmatpush.msra.mxu1 %v1832_v51  ;;  %v1869_v63 = vld [vmem:[#allocation6 + $0x298] sm:$0xff]  ;;  %v1907_v46 = vld [vmem:[#allocation6 + $0x3c8] sm:$0xff] }
 0x5a0   : > { %1968 = vmatpush.msra.mxu2 %v1864_v0  ;;  %1988 = vmatpush.msra.mxu3 %v1896_v1  ;;  %v1795_v51 = vld [vmem:[#allocation6 + $0x48] sm:$0xff]  ;;  %v1833_v0 = vld [vmem:[#allocation6 + $0x178] sm:$0xff] }
 0x5a1   : > { %1929 = vmatpush.msra.mxu0 %v1798_v2  ;;  %1949 = vmatpush.msra.mxu1 %v1830_v3  ;;  %v1867_v1 = vld [vmem:[#allocation6 + $0x288] sm:$0xff]  ;;  %v1905_v2 = vld [vmem:[#allocation6 + $0x3b8] sm:$0xff] }
 0x5a2   : > { %1969 = vmatpush.msra.mxu2 %v1862_v4  ;;  %1989 = vmatpush.msra.mxu3 %v1894_v5  ;;  %v1793_v3 = vld [vmem:[#allocation6 + $0x38] sm:$0xff]  ;;  %v1831_v4 = vld [vmem:[#allocation6 + $0x168] sm:$0xff] }
 0x5a3   : > { %1930 = vmatpush.msra.mxu0 %v1796_v6  ;;  %1950 = vmatpush.msra.mxu1 %v1828_v7  ;;  %v1865_v5 = vld [vmem:[#allocation6 + $0x278] sm:$0xff]  ;;  %v1903_v6 = vld [vmem:[#allocation6 + $0x3a8] sm:$0xff] }
 0x5a4   : > { %1970 = vmatpush.msra.mxu2 %v1860_v8  ;;  %1990 = vmatpush.msra.mxu3 %v1892_v9  ;;  %v1791_v7 = vld [vmem:[#allocation6 + $0x28] sm:$0xff]  ;;  %v1829_v8 = vld [vmem:[#allocation6 + $0x158] sm:$0xff] }
 0x5a5   : > { %1931 = vmatpush.msra.mxu0 %v1794_v10  ;;  %1951 = vmatpush.msra.mxu1 %v1826_v11  ;;  %v1863_v9 = vld [vmem:[#allocation6 + $0x268] sm:$0xff]  ;;  %v1901_v10 = vld [vmem:[#allocation6 + $0x398] sm:$0xff] }
 0x5a6   : > { %1971 = vmatpush.msra.mxu2 %v1858_v12  ;;  %1991 = vmatpush.msra.mxu3 %v1890_v13  ;;  %v1789_v11 = vld [vmem:[#allocation6 + $0x18] sm:$0xff]  ;;  %v1827_v12 = vld [vmem:[#allocation6 + $0x148] sm:$0xff] }
 0x5a7   : > { %1932 = vmatpush.msra.mxu0 %v1792_v14  ;;  %1952 = vmatpush.msra.mxu1 %v1824_v15  ;;  %v1861_v13 = vld [vmem:[#allocation6 + $0x258] sm:$0xff]  ;;  %v1899_v14 = vld [vmem:[#allocation6 + $0x388] sm:$0xff] }
 0x5a8   : > { %1972 = vmatpush.msra.mxu2 %v1856_v16  ;;  %1992 = vmatpush.msra.mxu3 %v1888_v17  ;;  %v1787_v15 = vld [vmem:[#allocation6 + $0x8] sm:$0xff]  ;;  %v1825_v16 = vld [vmem:[#allocation6 + $0x138] sm:$0xff] }
 0x5a9   : > { %1933 = vmatpush.msra.mxu0 %v1790_v18  ;;  %1953 = vmatpush.msra.mxu1 %v1822_v19  ;;  %v1859_v17 = vld [vmem:[#allocation6 + $0x248] sm:$0xff]  ;;  %v1897_v18 = vld [vmem:[#allocation6 + $0x378] sm:$0xff] }
 0x5aa   : > { %1973 = vmatpush.msra.mxu2 %v1854_v20  ;;  %1993 = vmatpush.msra.mxu3 %v1886_v21  ;;  %v1823_v19 = vld [vmem:[#allocation6 + $0x128] sm:$0xff]  ;;  %v1857_v20 = vld [vmem:[#allocation6 + $0x238] sm:$0xff] }
 0x5ab   : > { %1934 = vmatpush.msra.mxu0 %v1788_v22  ;;  %1954 = vmatpush.msra.mxu1 %v1820_v23  ;;  %v1895_v21 = vld [vmem:[#allocation6 + $0x368] sm:$0xff]  ;;  %v1821_v22 = vld [vmem:[#allocation6 + $0x118] sm:$0xff] }
 0x5ac   : > { %1974 = vmatpush.msra.mxu2 %v1852_v24  ;;  %1994 = vmatpush.msra.mxu3 %v1884_v25  ;;  %v1855_v23 = vld [vmem:[#allocation6 + $0x228] sm:$0xff]  ;;  %v1893_v24 = vld [vmem:[#allocation6 + $0x358] sm:$0xff] }
 0x5ad   : > { %1935 = vmatpush.msra.mxu0 %v1786_v26  ;;  %1955 = vmatpush.msra.mxu1 %v1818_v30  ;;  %v1819_v25 = vld [vmem:[#allocation6 + $0x108] sm:$0xff]  ;;  %v1853_v26 = vld [vmem:[#allocation6 + $0x218] sm:$0xff] }
 0x5ae   : > { %1975 = vmatpush.msra.mxu2 %v1850_v33  ;;  %1995 = vmatpush.msra.mxu3 %v1882_v56  ;;  %v1891_v30 = vld [vmem:[#allocation6 + $0x348] sm:$0xff]  ;;  %v1885_v56 = vld [vmem:[#allocation6 + $0x318] sm:$0xff] }
 0x5af   : > { %2000 = vmatpush.msrb.mxu0 %v1817_v31  ;;  %2020 = vmatpush.msrb.mxu1 %v1849_v32  ;;  %v1851_v31 = vld [vmem:[#allocation6 + $0x208] sm:$0xff]  ;;  %v1889_v32 = vld [vmem:[#allocation6 + $0x338] sm:$0xff] }
 0x5b0   : > { %2040 = vmatpush.msrb.mxu2 %v1881_v35  ;;  %2060 = vmatpush.msrb.mxu3 %v1913_v36  ;;  %v1887_v33 = vld [vmem:[#allocation6 + $0x328] sm:$0xff] }
 0x5b1   : > { %2001 = vmatpush.msrb.mxu0 %v1815_v57  ;;  %2021 = vmatpush.msrb.mxu1 %v1847_v34  ;;  %v1612_v57 = vld [vmem:[%s3739_s9] sm:$0xf]  ;;  %v1883_v34 = vld [vmem:[#allocation6 + $0x308] sm:$0xff] }
 0x5b2   : > { %2041 = vmatpush.msrb.mxu2 %v1879_v39  ;;  %2061 = vmatpush.msrb.mxu3 %v1911_v58  ;;  %v1614_v35 = vperm.slane %v1612_v57, 0  ;;  %v1617_v58 = vperm.slane %v1612_v57, 3 }
 0x5b3   : > { %2002 = vmatpush.msrb.mxu0 %v1813_v37  ;;  %2022 = vmatpush.msrb.mxu1 %v1845_v38 }
 0x5b4   : > { %2042 = vmatpush.msrb.mxu2 %v1877_v42  ;;  %2062 = vmatpush.msrb.mxu3 %v1909_v62  ;;  %v1616_v42 = vperm.slane %v1612_v57, 2 }
 0x5b5   : > { %2003 = vmatpush.msrb.mxu0 %v1811_v40  ;;  %2023 = vmatpush.msrb.mxu1 %v1843_v41  ;;  %v1615_v40 = vperm.slane %v1612_v57, 1 }
 0x5b6   : > { %2043 = vmatpush.msrb.mxu2 %v1875_v47  ;;  %2063 = vmatpush.msrb.mxu3 %v1907_v46 }
 0x5b7   : > { %2004 = vmatpush.msrb.mxu0 %v1809_v44  ;;  %2024 = vmatpush.msrb.mxu1 %v1841_v45 }
 0x5b8   : > { %2044 = vmatpush.msrb.mxu2 %v1873_v27  ;;  %2064 = vmatpush.msrb.mxu3 %v1905_v2 }
 0x5b9   : > { %2005 = vmatpush.msrb.mxu0 %v1807_v48  ;;  %2025 = vmatpush.msrb.mxu1 %v1839_v53 }
 0x5ba   : > { %2045 = vmatpush.msrb.mxu2 %v1871_v61  ;;  %2065 = vmatpush.msrb.mxu3 %v1903_v6 }
 0x5bb   : > { %2006 = vmatpush.msrb.mxu0 %v1805_v49  ;;  %2026 = vmatpush.msrb.mxu1 %v1837_v60 }
 0x5bc   : > { %2046 = vmatpush.msrb.mxu2 %v1869_v63  ;;  %2066 = vmatpush.msrb.mxu3 %v1901_v10 }
 0x5bd   : > { %2007 = vmatpush.msrb.mxu0 %v1803_v50  ;;  %2027 = vmatpush.msrb.mxu1 %v1835_v55 }
 0x5be   : > { %2047 = vmatpush.msrb.mxu2 %v1867_v1  ;;  %2067 = vmatpush.msrb.mxu3 %v1899_v14 }
 0x5bf   : > { %2008 = vmatpush.msrb.mxu0 %v1801_v52  ;;  %2028 = vmatpush.msrb.mxu1 %v1833_v0 }
 0x5c0   : > { %2048 = vmatpush.msrb.mxu2 %v1865_v5  ;;  %2068 = vmatpush.msrb.mxu3 %v1897_v18 }
 0x5c1   : > { %2009 = vmatpush.msrb.mxu0 %v1799_v59  ;;  %2029 = vmatpush.msrb.mxu1 %v1831_v4 }
 0x5c2   : > { %2049 = vmatpush.msrb.mxu2 %v1863_v9  ;;  %2069 = vmatpush.msrb.mxu3 %v1895_v21 }
 0x5c3   : > { %2010 = vmatpush.msrb.mxu0 %v1797_v54  ;;  %2030 = vmatpush.msrb.mxu1 %v1829_v8 }
 0x5c4   : > { %2050 = vmatpush.msrb.mxu2 %v1861_v13  ;;  %2070 = vmatpush.msrb.mxu3 %v1893_v24 }
 0x5c5   : > { %2011 = vmatpush.msrb.mxu0 %v1795_v51  ;;  %2031 = vmatpush.msrb.mxu1 %v1827_v12  ;;  %v1914_v51 = vld [vmem:[%s3741_s11] sm:$0x3] }
 0x5c6   : > { %2051 = vmatpush.msrb.mxu2 %v1859_v17  ;;  %2071 = vmatpush.msrb.mxu3 %v1891_v30  ;;  %v1916_v1 = vperm.slane %v1914_v51, 0  ;;  %v1917_v2 = vperm.slane %v1914_v51, 1 }
 0x5c7   : > { %2012 = vmatpush.msrb.mxu0 %v1793_v3  ;;  %2032 = vmatpush.msrb.mxu1 %v1825_v16 }
 0x5c8   : > { %2052 = vmatpush.msrb.mxu2 %v1857_v20  ;;  %2072 = vmatpush.msrb.mxu3 %v1889_v32 }
 0x5c9   : > { %2013 = vmatpush.msrb.mxu0 %v1791_v7  ;;  %2033 = vmatpush.msrb.mxu1 %v1823_v19 }
 0x5ca   : > { %2053 = vmatpush.msrb.mxu2 %v1855_v23  ;;  %2073 = vmatpush.msrb.mxu3 %v1887_v33 }
 0x5cb   : > { %2014 = vmatpush.msrb.mxu0 %v1789_v11  ;;  %2034 = vmatpush.msrb.mxu1 %v1821_v22 }
 0x5cc   : > { %2054 = vmatpush.msrb.mxu2 %v1853_v26  ;;  %2074 = vmatpush.msrb.mxu3 %v1885_v56 }
 0x5cd   : > { %2015 = vmatpush.msrb.mxu0 %v1787_v15  ;;  %2035 = vmatpush.msrb.mxu1 %v1819_v25 }
 0x5ce   : > { %2055 = vmatpush.msrb.mxu2 %v1851_v31  ;;  %2075 = vmatpush.msrb.mxu3 %v1883_v34 }
 0x608   : > { %v1639_v36 = vpop.f32.mrf.mxu0  ;;  %v1659_v37 = vpop.f32.mrf.mxu1 }
 0x609   : > { %v1640_v38 = vadd.f32 %v1639_v36, %v1614_v35 }
 0x60b   : > { %v1660_v39 = vadd.f32 %v1659_v37, %v1640_v38 }
 0x60d   : > { %v1782_v41 = vmax.f32 %v1660_v39, 0.0 }
 0x60f   : > { %v1679_v44 = vpop.f32.mrf.mxu2  ;;  %v1699_v45 = vpop.f32.mrf.mxu3  ;;  %1936 = vmatmul.f32.vlgmr.msra.gmra.mxu0 %v1782_v41 }
 0x610   : > { %v1680_v47 = vadd.f32 %v1679_v44, %v1615_v40  ;;  %v1719_v48 = vpop.f32.mrf.mxu0  ;;  %v1739_v52 = vpop.f32.mrf.mxu1 }
 0x611   : > { %v1720_v49 = vadd.f32 %v1719_v48, %v1616_v42 }
 0x612   : > { %v1700_v50 = vadd.f32 %v1699_v45, %v1680_v47 }
 0x613   : > { %v1740_v53 = vadd.f32 %v1739_v52, %v1720_v49 }
 0x614   : > { %v1783_v27 = vmax.f32 %v1700_v50, 0.0 }
 0x615   : > { %v1784_v59 = vmax.f32 %v1740_v53, 0.0 }
 0x616   : > { %1956 = vmatmul.f32.vlgmr.msra.gmra.mxu1 %v1783_v27 }
 0x617   : > { %v1759_v60 = vpop.f32.mrf.mxu2  ;;  %1976 = vmatmul.f32.vlgmr.msra.gmra.mxu2 %v1784_v59  ;;  %2016 = vmatmul.f32.vlgmr.msrb.gmra.mxu0 %v1782_v41  ;;  %v1779_v62 = vpop.f32.mrf.mxu3 }
 0x618   : > { %v1760_v61 = vadd.f32 %v1759_v60, %v1617_v58 }
 0x61a   : > { %v1780_v54 = vadd.f32 %v1779_v62, %v1760_v61 }
 0x61c   : > { %v1785_v55 = vmax.f32 %v1780_v54, 0.0 }
 0x61e   : > { %1996 = vmatmul.f32.vlgmr.msra.gmra.mxu3 %v1785_v55  ;;  %2036 = vmatmul.f32.vlgmr.msrb.gmra.mxu1 %v1783_v27 }
 0x61f   : > { %2056 = vmatmul.f32.vlgmr.msrb.gmra.mxu2 %v1784_v59 }
 0x626   : > { %2076 = vmatmul.f32.vlgmr.msrb.gmra.mxu3 %v1785_v55 }
 0x68c   : > { %v1937_v63 = vpop.f32.mrf.mxu0 }
 0x68d   : > { %v1938_v5 = vadd.f32 %v1937_v63, %v1916_v1 }
 0x693   : > { %v1957_v46 = vpop.f32.mrf.mxu1 }
 0x694   : > { %v2017_v3 = vpop.f32.mrf.mxu0  ;;  %v1958_v7 = vadd.f32 %v1957_v46, %v1938_v5 }
 0x695   : > { %v2018_v8 = vadd.f32 %v2017_v3, %v1917_v2 }
 0x69a   : > { %v1977_v0 = vpop.f32.mrf.mxu2 }
 0x69b   : > { %v2037_v6 = vpop.f32.mrf.mxu1  ;;  %v1978_v10 = vadd.f32 %v1977_v0, %v1958_v7 }
 0x69c   : > { %v2038_v11 = vadd.f32 %v2037_v6, %v2018_v8 }
 0x6a1   : > { %v1997_v4 = vpop.f32.mrf.mxu3 }
 0x6a2   : > { %v2057_v9 = vpop.f32.mrf.mxu2  ;;  %v1998_v12 = vadd.f32 %v1997_v4, %v1978_v10 }
 0x6a3   : > { %v2058_v13 = vadd.f32 %v2057_v9, %v2038_v11 }
 0x6a4   : > { %v2080_v16 = vadd.f32 %v1998_v12, %v3653_v28 }
 0x6a9   : > { %v2077_v14 = vpop.f32.mrf.mxu3 }
 0x6aa   : > { %v2078_v15 = vadd.f32 %v2077_v14, %v2058_v13 }
 0x6ac   : > { %v2081_v17 = vadd.f32 %v2078_v15, %v3655_v29 }
 0x6ae   : > { %v2084_v18 = vadd.f32 %v2081_v17, %v2080_v16 }
 0x6b0   : > { %2085 = vadd.xlane.f32.xlu1 %v2084_v18 }
 0x723   : > { %v2086_v19 = vpop.xlane.xlu1 %2085 }
 0x724   : > { %v2087_v20 = vmul.f32 %v2086_v19, %v3631_v43 }
 0x726   : > { %v2088_v21 = vsub.f32 %v2080_v16, %v2087_v20  ;;  %v2089_v22 = vsub.f32 %v2081_v17, %v2087_v20 }
 0x728   : > { %v2090_v23 = vmul.f32 %v2088_v21, %v2088_v21  ;;  %v2091_v24 = vmul.f32 %v2089_v22, %v2089_v22 }
 0x72a   : > { %v2092_v25 = vadd.f32 %v2091_v24, %v2090_v23 }
 0x72c   : > { %2093 = vadd.xlane.f32.xlu1 %v2092_v25 }
 0x72d   : > { %2505 = shalt.err (!%p2502_p8)
}
 0x72e   : > { %s2591_s24 = smov 128   ;;  %s2592_s27 = smov 8   ;;  %v2082_v56 = vld [vmem:[%s3742_s12] sm:$0x3] }
 0x72f   : > { %2331 = dma.vmem_to_hbm [thread:$0]  (%p2711_p5), %s2159_s25, 512, %s2161_s26, %s2131_s21, %s2591_s24, %s2591_s24, %s2592_s27   ;;  %v2110_v35 = vperm.slane %v2082_v56, 0  ;;  %v2111_v36 = vperm.slane %v2082_v56, 1 }
 0x730   : > { %s2295_s2 = sshll.u32 %s3394_s8, 4  ;;  %s2320_s29 = sshll.u32 %s2694_s22, 4 }
 0x731   : > { %s2142_s21 = scalar_lea.hbm %s3744_s14, %s2320_s29  ;;  %s536_s22 = scalar_lea.vmem [#allocation8], %s2295_s2 }
 0x732   : > { %s2144_s17 = sshll.u32 %s536_s22, 4  ;;  %s2146_s18 = sshll.u32 %s2142_s21, 4  ;;  %s2145_s17 = int_to_ptr.vmem [resolvable:$true] %s2144_s17  ;;  %s2147_s18 = int_to_ptr.hbm [resolvable:$true] %s2146_s18 }
 0x733   : > { %s2126_s16 = scalar_lea.sflag [#allocation5], %s3394_s8  ;;  %s2520_s20 = sshra.s32 %s2147_s18, 4  ;;  %s2521_s20 = int_to_ptr.hbm [resolvable:$true] %s2520_s20 }
 0x734   : > { %s2522_s24 = scalar_lea.hbm %s2521_s20, 16  ;;  %s2526_s1 = scalar_lea.hbm %s3744_s14, 32 }
 0x735   : > { %p2523_p9 = scmp.ne.s32.totalorder %s2521_s20, %s2522_s24  ;;  %p2527_p12 = scmp.lt.s32.totalorder %s2521_s20, %s3744_s14 }
 0x736   : > { %p2528_p13 = scmp.lt.s32.totalorder %s2526_s1, %s2522_s24 }
 0x737   : > { %p2524_p10 = pnand %p2523_p9, %p2711_p5 }
 0x738   : > { %p2529_p0 = por %p2528_p13, %p2527_p12 }
 0x739   : > { %p2525_p11 = pneg %p2524_p10 }
 0x73b   : > { %p2530_p1 = pnand %p2529_p0, %p2525_p11 }
 0x79f   : > { %v2094_v28 = vpop.xlane.xlu1 %2093 }
 0x7a0   : > { %v2095_v29 = vmul.f32 %v2094_v28, %v3631_v43  ;;  %v2083_v43 = vld [vmem:[%s3743_s13] sm:$0x3] }
 0x7a1   : > { %v2117_v40 = vperm.slane %v2083_v43, 0  ;;  %v2118_v41 = vperm.slane %v2083_v43, 1 }
 0x7a2   : > { %v2096_v26 = vadd.f32 1e-05, %v2095_v29 }
 0x7a4   : > { %2416 = vrsqrt.f32 %v2096_v26  ;;  %vm2103_vm10 = vweird.f32 %v2096_v26 }
 0x7aa   : > { %v2417_v30 = vpop.eup %2416 }
 0x7ab   : > { %v2098_v31 = vmul.f32 %v2417_v30, %v2096_v26  ;;  %vm2104_vm9 = vweird.f32 %v2417_v30 }
 0x7ac   : > { %vm2105_vm11 = vmor %vm2103_vm10, %vm2104_vm9 }
 0x7ad   : > { %v2099_v32 = vmul.f32 %v2417_v30, %v2098_v31 }
 0x7af   : > { %v2100_v33 = vmul.f32 0.5, %v2099_v32 }
 0x7b1   : > { %v2101_v57 = vsub.f32 1.5, %v2100_v33 }
 0x7b3   : > { %v2102_v34 = vmul.f32 %v2417_v30, %v2101_v57 }
 0x7b5   : > { %v2106_v37 = vsel %vm2105_vm11, %v2417_v30, %v2102_v34 }
 0x7b6   : > { %v2107_v38 = vmul.f32 %v2106_v37, %v2088_v21  ;;  %v2108_v39 = vmul.f32 %v2106_v37, %v2089_v22 }
 0x7b8   : > { %v2114_v42 = vmul.f32 %v2110_v35, %v2107_v38  ;;  %v2115_v44 = vmul.f32 %v2111_v36, %v2108_v39 }
 0x7ba   : > { %v2121_v45 = vadd.f32 %v2117_v40, %v2114_v42  ;;  %v2122_v47 = vadd.f32 %v2118_v41, %v2115_v44 }
 0x7bc   : > { %2123 = vst [vmem:[%s536_s22] sm:$0xff] %v2121_v45 }
 0x7bd   : > { %2124 = vst [vmem:[%s536_s22 + $0x8] sm:$0xff] %v2122_v47 }
 0x7be   : > { %2533 = shalt.err (!%p2530_p1)
}
 0x7bf   : > { %2330 = dma.vmem_to_hbm [thread:$0]  (%p2711_p5), %s2145_s17, 256, %s2147_s18, %s2126_s16  }
 0x7c0 PF: > { %s3771_s8 = sld [smem:[#allocation17_spill]] }
 0x7c1   : > { %s3772_s23 = sld [smem:[#allocation15_spill]] }
 0x7c6   : > { %p2352_p2 = scmp.ge.s32.totalorder %s3771_s8, 2 }
 0x7c7   : > { %s2175_s25 = sand.u32 1, %s3772_s23  }
 0x7c8   : > { %p2342_p3 = pnand %p2352_p2, %p2715_p6  ;;  %s2176_s26 = scalar_lea.sflag [#allocation5], %s2175_s25 }
 0x7ca   : > { %p2343_p4 = pneg %p2342_p3 }
 0x7cc   : > { %2559 = dma.done.wait (%p2343_p4), %s2176_s26, 256  }
 0x7cd   : > { %2561 = vsyncadd (%p2343_p4), %s2176_s26, 4294967040  ;;  %s2186_s21 = scalar_lea.sflag [#allocation10], %s2175_s25 }
 0x7ce   : > { %2563 = dma.done.wait (%p2343_p4), %s2186_s21, 512  }
 0x7cf   : > { %2565 = vsyncadd (%p2343_p4), %s2186_s21, 4294966784  ;;  %s3774_s21 = sld [smem:[#allocation18_spill]]  ;;  %s3777_s18 = smov %s2572_s19 }
 0x7d0   : > { %s3775_s22 = sld [smem:[#allocation16_spill]] }
 0x7d1   : > { %s3776_s20 = sld [smem:[#allocation19_spill]] }
 0x7d5   : > { %p31_p5 = scmp.ge.s32.totalorder %s3774_s21, 4  }
 0x7d6   : > { %s3778_s19 = smov %s3775_s22 }
 0x7d7   :  { %33 = sbr.rel (!%p31_p5) target bundleno = 12 (0xc), region = 140 }
 0x7dc   :  { %2192 = vsyncpa [#allocation4], 1 }
 0x7dd   :  { %2194 = vsyncpa [#allocation4 + $0x1], 1 }
 0x7de   :  { %2195 = vsyncpa [#allocation7], 1 }
 0x7df   :  { %2196 = vsyncpa [#allocation5], 1 }
 0x7e0   :  { %2198 = vsyncpa [#allocation5 + $0x1], 1 }
 0x7e1   :  { %2199 = vsyncpa [#allocation10], 1 }
 0x7e2   :  { %2201 = vsyncpa [#allocation10 + $0x1], 1 }

</bundles_post_ra>
